<compile_context>
chip_gen: v7x
topology: tpu7x:2x2x1
jax: 0.10.0
libtpu: 0.0.40
codegen_flags: <defaults>
</compile_context>

<pallas_src>
import functools

import jax
import jax.numpy as jnp
from jax import lax
from jax.experimental import pallas as pl
from jax.experimental.pallas import tpu as pltpu

_LANE = 128


def _round_up(n, m):
    return ((n + m - 1) // m) * m


def _vmem_capacity_bytes():
    """Physical VMEM per TensorCore (generation-aware), with a safe default."""
    try:
        info = pltpu.get_tpu_info()
        cap = int(getattr(info, "vmem_capacity_bytes"))
        if cap > 0:
            return cap
    except Exception:
        pass
    return 64 * 1024 * 1024  # conservative (v7x per-TC); v5e/v6e have 128 MiB


def _pick_block_batch(B, L, cp, pp, budget_bytes):
    """Largest batch tile whose working set fits the VMEM budget, while
    keeping the grid >= 2 so v7x's two TensorCores both get work."""
    bytes_per_row = (
        2 * 2 * cp      # bf16 input tile, double-buffered
        + 2 * 4 * cp    # f32 output tile, double-buffered
        + 24 * pp       # f32 h1/h2/y0..y2 + bf16 copies (estimate)
        + 12 * cp       # f32 residual / h3 / out temporaries (estimate)
    )
    weight_bytes = 2 * (cp * pp + 3 * pp * pp + pp * cp) + 4 * (3 * pp + cp)
    avail = max(budget_bytes - weight_bytes, bytes_per_row * L)
    bt_max = max(1, avail // (bytes_per_row * L))

    bt = 1
    for d in range(1, B + 1):
        if B % d == 0 and d <= bt_max:
            bt = d
    # Keep grid >= 2 (megacore sharding on v7x; cheap extra step elsewhere).
    if B >= 2 and bt == B:
        for d in range(B // 2, 0, -1):
            if B % d == 0:
                bt = d
                break
    return bt


# -----------------------------------------------------------------------------
# Pallas kernel: one tile of `bt` batch elements (bt*L fused rows) per step.
# -----------------------------------------------------------------------------
def _bottleneck_kernel(x_ref, w1_ref, b1_ref, w2_ref, b2_ref, w3_ref, b3_ref,
                       o_ref, *, seq_len):
    bt, L, cp = x_ref.shape
    m = bt * L

    x = x_ref[...].reshape(m, cp)                              # bf16 (M, Cp)

    # conv1x1 + BN1 + ReLU  ->  (M, Pp), f32 accumulate on MXU.
    h1 = jnp.dot(x, w1_ref[...], preferred_element_type=jnp.float32)
    h1 = jnp.maximum(h1 + b1_ref[...], 0.0)
    h1b = h1.astype(jnp.bfloat16)

    # conv3x3 (padding=1, stride=1) + BN2 + ReLU as three accumulating dots:
    #   out[l] = h1[l-1] @ W0 + h1[l] @ W1 + h1[l+1] @ W2
    # The +-1 taps are applied by rolling the f32 matmul OUTPUTS with
    # positive-shift pltpu.roll (XLU slot, otherwise idle) and masking rows at
    # batch-segment boundaries of the fused (bt*L) M dimension, so taps never
    # leak between batch elements and no (M, 3P) concat buffer is built.
    # (Alternative: one fused (M,3P)@(3P,P) matmul; three K=Pp dots keep VMEM
    # smaller and avoid the concat store traffic.)
    pos = lax.broadcasted_iota(jnp.int32, (m, 1), 0) % seq_len   # (M, 1)
    y0 = jnp.dot(h1b, w2_ref[0], preferred_element_type=jnp.float32)
    y1 = jnp.dot(h1b, w2_ref[1], preferred_element_type=jnp.float32)
    y2 = jnp.dot(h1b, w2_ref[2], preferred_element_type=jnp.float32)
    h2 = (y1
          + jnp.where(pos == 0, 0.0, pltpu.roll(y0, shift=1, axis=0))
          + jnp.where(pos == seq_len - 1, 0.0,
                      pltpu.roll(y2, shift=m - 1, axis=0)))
    h2 = jnp.maximum(h2 + b2_ref[...], 0.0)

    # conv1x1 + BN3, residual add (x upcast to f32), ReLU -> lane-dense store.
    h3 = jnp.dot(h2.astype(jnp.bfloat16), w3_ref[...],
                 preferred_element_type=jnp.float32)
    o = jnp.maximum(h3 + b3_ref[...] + x.astype(jnp.float32), 0.0)
    o_ref[...] = o.reshape(bt, L, cp)


# -----------------------------------------------------------------------------
# Wrapper
# -----------------------------------------------------------------------------
def prepare_weights(w1, b1, w2, b2, w3, b3):
    """Pad/cast BN-folded weights once (hoisted out of the per-call path).
    w1:(Cin,P) b1:(1,P)  w2:(3,P,P) b2:(1,P)  w3:(P,4P) b3:(1,4P)."""
    Cin, P = w1.shape
    Cout = w3.shape[1]
    # Residual path (downsample=None, stride=1) requires inplanes == 4*planes.
    assert Cin == Cout, (Cin, Cout)
    cp = _round_up(Cin, _LANE)
    pp = _round_up(P, _LANE)
    return dict(
        w1=jnp.pad(w1, ((0, cp - Cin), (0, pp - P))).astype(jnp.bfloat16),
        b1=jnp.pad(b1, ((0, 0), (0, pp - P))).astype(jnp.float32),
        w2=jnp.pad(w2, ((0, 0), (0, pp - P), (0, pp - P))).astype(jnp.bfloat16),
        b2=jnp.pad(b2, ((0, 0), (0, pp - P))).astype(jnp.float32),
        w3=jnp.pad(w3, ((0, pp - P), (0, cp - Cout))).astype(jnp.bfloat16),
        b3=jnp.pad(b3, ((0, 0), (0, cp - Cout))).astype(jnp.float32),
        cin=Cin, cout=Cout, cp=cp, pp=pp,
    )


def bottleneck_pallas(x_nlc, prep, *, block_batch=None):
    """x_nlc: (B, L, Cin) float32/bfloat16; prep: output of prepare_weights.
    Returns (B, L, Cout) float32."""
    B, L, Cin = x_nlc.shape
    assert Cin == prep["cin"]
    cp, pp, Cout = prep["cp"], prep["pp"], prep["cout"]

    # Activation DMA'd as bf16: kernel is HBM-bound at typical widths, so this
    # halves input bytes and the input-tile VMEM.  Skip the pad when channels
    # are already lane-aligned (avoids an extra full HBM read+write).
    xb = x_nlc.astype(jnp.bfloat16)
    if cp != Cin:
        xb = jnp.pad(xb, ((0, 0), (0, 0), (0, cp - Cin)))

    vmem_cap = _vmem_capacity_bytes()
    budget = vmem_cap // 2                                   # working-set target
    vmem_limit = min(int(0.75 * vmem_cap), 100 * 1024 * 1024)

    if block_batch is None:
        bt = _pick_block_batch(B, L, cp, pp, budget)
    else:
        bt = block_batch
        assert B % bt == 0
    grid = (B // bt,)

    kernel = functools.partial(_bottleneck_kernel, seq_len=L)
    out_shape = jax.ShapeDtypeStruct((B, L, cp), jnp.float32)

    def run(single_buffer_weights):
        def wspec(a):
            idx = lambda i, _nd=a.ndim: (0,) * _nd
            if single_buffer_weights:
                # Constant index map -> never re-fetched; one buffer is enough.
                return pl.BlockSpec(a.shape, idx, pipeline_mode=pl.Buffered(1))
            return pl.BlockSpec(a.shape, idx)

        return pl.pallas_call(
            kernel,
            out_shape=out_shape,
            grid_spec=pltpu.PrefetchScalarGridSpec(
                num_scalar_prefetch=0,
                grid=grid,
                in_specs=[
                    pl.BlockSpec((bt, L, cp), lambda i: (i, 0, 0)),
                    wspec(prep["w1"]), wspec(prep["b1"]),
                    wspec(prep["w2"]), wspec(prep["b2"]),
                    wspec(prep["w3"]), wspec(prep["b3"]),
                ],
                out_specs=pl.BlockSpec((bt, L, cp), lambda i: (i, 0, 0)),
            ),
            compiler_params=pltpu.CompilerParams(
                dimension_semantics=("parallel",),
                vmem_limit_bytes=vmem_limit),
        )(xb, prep["w1"], prep["b1"], prep["w2"], prep["b2"],
          prep["w3"], prep["b3"])

    try:
        out = run(True)
    except Exception:
        # Fallback if this JAX build rejects single-buffered pipeline_mode.
        out = run(False)

    if cp != Cout:
        out = out[:, :, :Cout]
    return out


# -----------------------------------------------------------------------------
# Parameter construction (deterministic) + BN folding (plain-JAX glue).
# -----------------------------------------------------------------------------
def make_params(key, inplanes, planes, eps=1e-5):
    expansion = 4
    ks = jax.random.split(key, 12)

    def conv_w(k, out_c, in_c, kw):
        fan_in = in_c * kw
        bound = 1.0 / jnp.sqrt(fan_in)
        return jax.random.uniform(k, (out_c, in_c, kw), jnp.float32,
                                  -bound, bound)

    def bn_p(k, c):
        k1, k2, k3, k4 = jax.random.split(k, 4)
        gamma = jax.random.uniform(k1, (c,), jnp.float32, 0.5, 1.5)
        beta = jax.random.uniform(k2, (c,), jnp.float32, -0.5, 0.5)
        mean = jax.random.uniform(k3, (c,), jnp.float32, -0.5, 0.5)
        var = jax.random.uniform(k4, (c,), jnp.float32, 0.5, 1.5)
        return gamma, beta, mean, var

    return {
        "conv1": conv_w(ks[0], planes, inplanes, 1),
        "bn1": bn_p(ks[1], planes),
        "conv2": conv_w(ks[2], planes, planes, 3),
        "bn2": bn_p(ks[3], planes),
        "conv3": conv_w(ks[4], planes * expansion, planes, 1),
        "bn3": bn_p(ks[5], planes * expansion),
        "eps": eps,
    }


def fold_params(p):
    """Fold BN (inference) into conv weights; return channels-last matrices."""
    eps = p["eps"]

    def fold(w_oik, bn):
        gamma, beta, mean, var = bn
        scale = gamma / jnp.sqrt(var + eps)          # (O,)
        w = w_oik * scale[:, None, None]             # (O, I, K)
        b = beta - mean * scale                      # (O,)
        return w, b

    w1, b1 = fold(p["conv1"], p["bn1"])
    w2, b2 = fold(p["conv2"], p["bn2"])
    w3, b3 = fold(p["conv3"], p["bn3"])

    # (O, I, 1) -> (I, O)
    w1m = jnp.transpose(w1[:, :, 0])                       # (Cin, P)
    w3m = jnp.transpose(w3[:, :, 0])                       # (P, 4P)
    # (O, I, 3) -> (3, I, O)   tap k multiplies x[l + k - 1]
    w2m = jnp.transpose(w2, (2, 1, 0))                     # (3, P, P)
    return (w1m, b1[None, :], w2m, b2[None, :], w3m, b3[None, :])


# -----------------------------------------------------------------------------
# Pure-JAX reference on the original NCL layout (raw conv + BN, full f32).
# -----------------------------------------------------------------------------
def bottleneck_ref_ncl(x_ncl, p):
    eps = p["eps"]

    def conv1d(x, w, pad):
        return lax.conv_general_dilated(
            x, w, window_strides=(1,), padding=[(pad, pad)],
            dimension_numbers=("NCH", "OIH", "NCH"))

    def bn(y, params):
        gamma, beta, mean, var = params
        return (gamma[None, :, None] * (y - mean[None, :, None])
                / jnp.sqrt(var[None, :, None] + eps) + beta[None, :, None])

    out = jax.nn.relu(bn(conv1d(x_ncl, p["conv1"], 0), p["bn1"]))
    out = jax.nn.relu(bn(conv1d(out, p["conv2"], 1), p["bn2"]))
    out = bn(conv1d(out, p["conv3"], 0), p["bn3"])
    return jax.nn.relu(out + x_ncl)


# -----------------------------------------------------------------------------
if __name__ == "__main__":
    # Small shapes: downsample=None, stride=1  =>  inplanes == planes * 4.
    B, planes, L = 2, 8, 16
    inplanes = planes * 4          # 32

    key = jax.random.PRNGKey(0)
    kx, kp = jax.random.split(key)
    x_ncl = jax.random.normal(kx, (B, inplanes, L), jnp.float32)  # PyTorch NCL

    params = make_params(kp, inplanes, planes)
    w1, b1, w2, b2, w3, b3 = fold_params(params)
    prep = prepare_weights(w1, b1, w2, b2, w3, b3)   # hoisted out of call path

    # NCL -> NLC for the kernel, NLC -> NCL on the way out.
    x_nlc = jnp.transpose(x_ncl, (0, 2, 1))
    out_nlc = bottleneck_pallas(x_nlc, prep)
    out_ncl = jnp.transpose(out_nlc, (0, 2, 1))
    out_ncl = jax.block_until_ready(out_ncl)

    ref = jax.block_until_ready(bottleneck_ref_ncl(x_ncl, params))
    assert out_ncl.shape == (B, inplanes, L)
    # bf16 MXU operands / bf16 activation DMA (f32 accumulation) => looser
    # tolerance than pure f32.
    err = float(jnp.max(jnp.abs(out_ncl - ref)))
    assert jnp.allclose(out_ncl, ref, atol=1e-1, rtol=5e-2), err

    print("KERNEL_OK")
</pallas_src>

<mosaic_0001>
module attributes {stable_mosaic.version = 11 : i64} {
  func.func @_bottleneck_kernel(%arg0: i32, %arg1: memref<1x16x128xbf16, #tpu.memory_space<vmem>>, %arg2: memref<128x128xbf16, #tpu.memory_space<vmem>>, %arg3: memref<1x128xf32, #tpu.memory_space<vmem>>, %arg4: memref<3x128x128xbf16, #tpu.memory_space<vmem>>, %arg5: memref<1x128xf32, #tpu.memory_space<vmem>>, %arg6: memref<128x128xbf16, #tpu.memory_space<vmem>>, %arg7: memref<1x128xf32, #tpu.memory_space<vmem>>, %arg8: memref<1x16x128xf32, #tpu.memory_space<vmem>>) attributes {dimension_semantics = [#tpu.dimension_semantics<parallel>], iteration_bounds = array<i64: 2>, scalar_prefetch = 0 : i64, scratch_operands = 0 : i64, tpu.core_type = #tpu.core_type<tc>, window_params = [{transform_indices = @transform_0, window_bounds = array<i64: 1, 16, 128>}, {pipeline_mode = #tpu.pipeline_mode<synchronous>, transform_indices = @transform_1, window_bounds = array<i64: 128, 128>}, {pipeline_mode = #tpu.pipeline_mode<synchronous>, transform_indices = @transform_2, window_bounds = array<i64: 1, 128>}, {pipeline_mode = #tpu.pipeline_mode<synchronous>, transform_indices = @transform_3, window_bounds = array<i64: 3, 128, 128>}, {pipeline_mode = #tpu.pipeline_mode<synchronous>, transform_indices = @transform_4, window_bounds = array<i64: 1, 128>}, {pipeline_mode = #tpu.pipeline_mode<synchronous>, transform_indices = @transform_5, window_bounds = array<i64: 128, 128>}, {pipeline_mode = #tpu.pipeline_mode<synchronous>, transform_indices = @transform_6, window_bounds = array<i64: 1, 128>}, {transform_indices = @transform_7, window_bounds = array<i64: 1, 16, 128>}]} {
    %c0 = arith.constant 0 : index
    %c0_0 = arith.constant 0 : index
    %c0_1 = arith.constant 0 : index
    %0 = vector.load %arg1[%c0, %c0_0, %c0_1] : memref<1x16x128xbf16, #tpu.memory_space<vmem>>, vector<1x16x128xbf16>
    %1 = vector.shape_cast %0 : vector<1x16x128xbf16> to vector<16x128xbf16>
    %c0_2 = arith.constant 0 : index
    %c0_3 = arith.constant 0 : index
    %2 = vector.load %arg2[%c0_2, %c0_3] : memref<128x128xbf16, #tpu.memory_space<vmem>>, vector<128x128xbf16>
    %cst = arith.constant dense<0.000000e+00> : vector<16x128xf32>
    %3 = tpu.matmul %1, %2, %cst {dimension_numbers = #tpu.dot_dimension_numbers<[1], [0], [0], [1], [0, 0, 1, 1], [], []>} : vector<16x128xbf16>, vector<128x128xbf16>, vector<16x128xf32> -> vector<16x128xf32>
    %c0_4 = arith.constant 0 : index
    %c0_5 = arith.constant 0 : index
    %4 = vector.load %arg3[%c0_4, %c0_5] : memref<1x128xf32, #tpu.memory_space<vmem>>, vector<1x128xf32>
    %5 = vector.broadcast %4 : vector<1x128xf32> to vector<16x128xf32>
    %6 = arith.addf %3, %5 : vector<16x128xf32>
    %cst_6 = arith.constant 0.000000e+00 : f32
    %7 = vector.broadcast %cst_6 : f32 to vector<16x128xf32>
    %8 = arith.maximumf %6, %7 : vector<16x128xf32>
    %9 = arith.truncf %8 : vector<16x128xf32> to vector<16x128xbf16>
    %10 = tpu.iota {dimensions = array<i32: 0>} : vector<16x1xi32>
    %c16_i32 = arith.constant 16 : i32
    %c0_i32 = arith.constant 0 : i32
    %11 = arith.cmpi eq, %c16_i32, %c0_i32 : i32
    %c1_i32 = arith.constant 1 : i32
    %12 = arith.select %11, %c1_i32, %c16_i32 : i32
    %13 = vector.broadcast %12 : i32 to vector<16x1xi32>
    %14 = arith.remsi %10, %13 : vector<16x1xi32>
    %c0_i32_7 = arith.constant 0 : i32
    %15 = vector.broadcast %c0_i32_7 : i32 to vector<16x1xi32>
    %16 = arith.cmpi ne, %14, %15 : vector<16x1xi32>
    %c0_i32_8 = arith.constant 0 : i32
    %17 = vector.broadcast %c0_i32_8 : i32 to vector<16x1xi32>
    %18 = arith.cmpi slt, %14, %17 : vector<16x1xi32>
    %c0_i32_9 = arith.constant 0 : i32
    %19 = arith.cmpi slt, %12, %c0_i32_9 : i32
    %20 = vector.broadcast %19 : i1 to vector<16x1xi1>
    %21 = vector.broadcast %20 : vector<16x1xi1> to vector<16x1xi1>
    %22 = arith.xori %18, %21 : vector<16x1xi1>
    %23 = arith.andi %22, %16 : vector<16x1xi1>
    %24 = vector.broadcast %12 : i32 to vector<16x1xi32>
    %25 = arith.addi %14, %24 : vector<16x1xi32>
    %26 = arith.select %23, %25, %14 : vector<16x1xi1>, vector<16x1xi32>
    %c0_10 = arith.constant 0 : index
    %c0_11 = arith.constant 0 : index
    %c0_12 = arith.constant 0 : index
    %27 = vector.load %arg4[%c0_10, %c0_11, %c0_12] : memref<3x128x128xbf16, #tpu.memory_space<vmem>>, vector<1x128x128xbf16>
    %28 = vector.shape_cast %27 : vector<1x128x128xbf16> to vector<128x128xbf16>
    %cst_13 = arith.constant dense<0.000000e+00> : vector<16x128xf32>
    %29 = tpu.matmul %9, %28, %cst_13 {dimension_numbers = #tpu.dot_dimension_numbers<[1], [0], [0], [1], [0, 0, 1, 1], [], []>} : vector<16x128xbf16>, vector<128x128xbf16>, vector<16x128xf32> -> vector<16x128xf32>
    %c1 = arith.constant 1 : index
    %c0_14 = arith.constant 0 : index
    %c0_15 = arith.constant 0 : index
    %30 = vector.load %arg4[%c1, %c0_14, %c0_15] : memref<3x128x128xbf16, #tpu.memory_space<vmem>>, vector<1x128x128xbf16>
    %31 = vector.shape_cast %30 : vector<1x128x128xbf16> to vector<128x128xbf16>
    %cst_16 = arith.constant dense<0.000000e+00> : vector<16x128xf32>
    %32 = tpu.matmul %9, %31, %cst_16 {dimension_numbers = #tpu.dot_dimension_numbers<[1], [0], [0], [1], [0, 0, 1, 1], [], []>} : vector<16x128xbf16>, vector<128x128xbf16>, vector<16x128xf32> -> vector<16x128xf32>
    %c2 = arith.constant 2 : index
    %c0_17 = arith.constant 0 : index
    %c0_18 = arith.constant 0 : index
    %33 = vector.load %arg4[%c2, %c0_17, %c0_18] : memref<3x128x128xbf16, #tpu.memory_space<vmem>>, vector<1x128x128xbf16>
    %34 = vector.shape_cast %33 : vector<1x128x128xbf16> to vector<128x128xbf16>
    %cst_19 = arith.constant dense<0.000000e+00> : vector<16x128xf32>
    %35 = tpu.matmul %9, %34, %cst_19 {dimension_numbers = #tpu.dot_dimension_numbers<[1], [0], [0], [1], [0, 0, 1, 1], [], []>} : vector<16x128xbf16>, vector<128x128xbf16>, vector<16x128xf32> -> vector<16x128xf32>
    %c0_i32_20 = arith.constant 0 : i32
    %36 = vector.broadcast %c0_i32_20 : i32 to vector<16x1xi32>
    %37 = arith.cmpi eq, %26, %36 : vector<16x1xi32>
    %c1_i32_21 = arith.constant 1 : i32
    %38 = tpu.dynamic_rotate %29 by %c1_i32_21 dim 0 : vector<16x128xf32>, i32 -> vector<16x128xf32>
    %cst_22 = arith.constant 0.000000e+00 : f32
    %39 = vector.shape_cast %37 : vector<16x1xi1> to vector<16x1xi1>
    %40 = vector.broadcast %39 : vector<16x1xi1> to vector<16x128xi1>
    %41 = vector.broadcast %cst_22 : f32 to vector<16x128xf32>
    %42 = arith.select %40, %41, %38 : vector<16x128xi1>, vector<16x128xf32>
    %43 = arith.addf %32, %42 : vector<16x128xf32>
    %c15_i32 = arith.constant 15 : i32
    %44 = vector.broadcast %c15_i32 : i32 to vector<16x1xi32>
    %45 = arith.cmpi eq, %26, %44 : vector<16x1xi32>
    %c15_i32_23 = arith.constant 15 : i32
    %46 = tpu.dynamic_rotate %35 by %c15_i32_23 dim 0 : vector<16x128xf32>, i32 -> vector<16x128xf32>
    %cst_24 = arith.constant 0.000000e+00 : f32
    %47 = vector.shape_cast %45 : vector<16x1xi1> to vector<16x1xi1>
    %48 = vector.broadcast %47 : vector<16x1xi1> to vector<16x128xi1>
    %49 = vector.broadcast %cst_24 : f32 to vector<16x128xf32>
    %50 = arith.select %48, %49, %46 : vector<16x128xi1>, vector<16x128xf32>
    %51 = arith.addf %43, %50 : vector<16x128xf32>
    %c0_25 = arith.constant 0 : index
    %c0_26 = arith.constant 0 : index
    %52 = vector.load %arg5[%c0_25, %c0_26] : memref<1x128xf32, #tpu.memory_space<vmem>>, vector<1x128xf32>
    %53 = vector.broadcast %52 : vector<1x128xf32> to vector<16x128xf32>
    %54 = arith.addf %51, %53 : vector<16x128xf32>
    %cst_27 = arith.constant 0.000000e+00 : f32
    %55 = vector.broadcast %cst_27 : f32 to vector<16x128xf32>
    %56 = arith.maximumf %54, %55 : vector<16x128xf32>
    %57 = arith.truncf %56 : vector<16x128xf32> to vector<16x128xbf16>
    %c0_28 = arith.constant 0 : index
    %c0_29 = arith.constant 0 : index
    %58 = vector.load %arg6[%c0_28, %c0_29] : memref<128x128xbf16, #tpu.memory_space<vmem>>, vector<128x128xbf16>
    %cst_30 = arith.constant dense<0.000000e+00> : vector<16x128xf32>
    %59 = tpu.matmul %57, %58, %cst_30 {dimension_numbers = #tpu.dot_dimension_numbers<[1], [0], [0], [1], [0, 0, 1, 1], [], []>} : vector<16x128xbf16>, vector<128x128xbf16>, vector<16x128xf32> -> vector<16x128xf32>
    %c0_31 = arith.constant 0 : index
    %c0_32 = arith.constant 0 : index
    %60 = vector.load %arg7[%c0_31, %c0_32] : memref<1x128xf32, #tpu.memory_space<vmem>>, vector<1x128xf32>
    %61 = vector.broadcast %60 : vector<1x128xf32> to vector<16x128xf32>
    %62 = arith.addf %59, %61 : vector<16x128xf32>
    %63 = arith.extf %1 : vector<16x128xbf16> to vector<16x128xf32>
    %64 = arith.addf %62, %63 : vector<16x128xf32>
    %cst_33 = arith.constant 0.000000e+00 : f32
    %65 = vector.broadcast %cst_33 : f32 to vector<16x128xf32>
    %66 = arith.maximumf %64, %65 : vector<16x128xf32>
    %67 = vector.shape_cast %66 : vector<16x128xf32> to vector<1x16x128xf32>
    %c0_34 = arith.constant 0 : index
    %c0_35 = arith.constant 0 : index
    %c0_36 = arith.constant 0 : index
    %68 = vector.load %arg8[%c0_34, %c0_35, %c0_36] : memref<1x16x128xf32, #tpu.memory_space<vmem>>, vector<1x16x128xf32>
    tpu.vector_store %arg8[%c0_34, %c0_35, %c0_36], %67 {strides = array<i32>} : memref<1x16x128xf32, #tpu.memory_space<vmem>>, vector<1x16x128xf32>,
    return
  }
  func.func @transform_0(%arg0: i32) -> (i32, i32, i32) {
    %c0_i32 = arith.constant 0 : i32
    %c0_i32_0 = arith.constant 0 : i32
    %c0_i32_1 = arith.constant 0 : i32
    return %arg0, %c0_i32, %c0_i32_0 : i32, i32, i32
  }
  func.func @transform_1(%arg0: i32) -> (i32, i32) {
    %c0_i32 = arith.constant 0 : i32
    %c0_i32_0 = arith.constant 0 : i32
    %c0_i32_1 = arith.constant 0 : i32
    return %c0_i32, %c0_i32_0 : i32, i32
  }
  func.func @transform_2(%arg0: i32) -> (i32, i32) {
    %c0_i32 = arith.constant 0 : i32
    %c0_i32_0 = arith.constant 0 : i32
    %c0_i32_1 = arith.constant 0 : i32
    return %c0_i32, %c0_i32_0 : i32, i32
  }
  func.func @transform_3(%arg0: i32) -> (i32, i32, i32) {
    %c0_i32 = arith.constant 0 : i32
    %c0_i32_0 = arith.constant 0 : i32
    %c0_i32_1 = arith.constant 0 : i32
    %c0_i32_2 = arith.constant 0 : i32
    return %c0_i32, %c0_i32_0, %c0_i32_1 : i32, i32, i32
  }
  func.func @transform_4(%arg0: i32) -> (i32, i32) {
    %c0_i32 = arith.constant 0 : i32
    %c0_i32_0 = arith.constant 0 : i32
    %c0_i32_1 = arith.constant 0 : i32
    return %c0_i32, %c0_i32_0 : i32, i32
  }
  func.func @transform_5(%arg0: i32) -> (i32, i32) {
    %c0_i32 = arith.constant 0 : i32
    %c0_i32_0 = arith.constant 0 : i32
    %c0_i32_1 = arith.constant 0 : i32
    return %c0_i32, %c0_i32_0 : i32, i32
  }
  func.func @transform_6(%arg0: i32) -> (i32, i32) {
    %c0_i32 = arith.constant 0 : i32
    %c0_i32_0 = arith.constant 0 : i32
    %c0_i32_1 = arith.constant 0 : i32
    return %c0_i32, %c0_i32_0 : i32, i32
  }
  func.func @transform_7(%arg0: i32) -> (i32, i32, i32) {
    %c0_i32 = arith.constant 0 : i32
    %c0_i32_0 = arith.constant 0 : i32
    %c0_i32_1 = arith.constant 0 : i32
    return %arg0, %c0_i32, %c0_i32_0 : i32, i32, i32
  }
}

module attributes {stable_mosaic.version = 11 : i64} {
  func.func @_bottleneck_kernel(%arg0: i32, %arg1: memref<1x16x128xbf16, #tpu.memory_space<vmem>>, %arg2: memref<128x128xbf16, #tpu.memory_space<vmem>>, %arg3: memref<1x128xf32, #tpu.memory_space<vmem>>, %arg4: memref<3x128x128xbf16, #tpu.memory_space<vmem>>, %arg5: memref<1x128xf32, #tpu.memory_space<vmem>>, %arg6: memref<128x128xbf16, #tpu.memory_space<vmem>>, %arg7: memref<1x128xf32, #tpu.memory_space<vmem>>, %arg8: memref<1x16x128xf32, #tpu.memory_space<vmem>>) attributes {dimension_semantics = [#tpu.dimension_semantics<parallel>], iteration_bounds = array<i64: 2>, scalar_prefetch = 0 : i64, scratch_operands = 0 : i64, tpu.core_type = #tpu.core_type<tc>, window_params = [{transform_indices = @transform_0, window_bounds = array<i64: 1, 16, 128>}, {pipeline_mode = #tpu.pipeline_mode<synchronous>, transform_indices = @transform_1, window_bounds = array<i64: 128, 128>}, {pipeline_mode = #tpu.pipeline_mode<synchronous>, transform_indices = @transform_2, window_bounds = array<i64: 1, 128>}, {pipeline_mode = #tpu.pipeline_mode<synchronous>, transform_indices = @transform_3, window_bounds = array<i64: 3, 128, 128>}, {pipeline_mode = #tpu.pipeline_mode<synchronous>, transform_indices = @transform_4, window_bounds = array<i64: 1, 128>}, {pipeline_mode = #tpu.pipeline_mode<synchronous>, transform_indices = @transform_5, window_bounds = array<i64: 128, 128>}, {pipeline_mode = #tpu.pipeline_mode<synchronous>, transform_indices = @transform_6, window_bounds = array<i64: 1, 128>}, {transform_indices = @transform_7, window_bounds = array<i64: 1, 16, 128>}]} {
    %c0 = arith.constant 0 : index
    %c0_0 = arith.constant 0 : index
    %c0_1 = arith.constant 0 : index
    %0 = vector.load %arg1[%c0, %c0_0, %c0_1] : memref<1x16x128xbf16, #tpu.memory_space<vmem>>, vector<1x16x128xbf16>
    %1 = vector.shape_cast %0 : vector<1x16x128xbf16> to vector<16x128xbf16>
    %c0_2 = arith.constant 0 : index
    %c0_3 = arith.constant 0 : index
    %2 = vector.load %arg2[%c0_2, %c0_3] : memref<128x128xbf16, #tpu.memory_space<vmem>>, vector<128x128xbf16>
    %cst = arith.constant dense<0.000000e+00> : vector<16x128xf32>
    %3 = tpu.matmul %1, %2, %cst {dimension_numbers = #tpu.dot_dimension_numbers<[1], [0], [0], [1], [0, 0, 1, 1], [], []>} : vector<16x128xbf16>, vector<128x128xbf16>, vector<16x128xf32> -> vector<16x128xf32>
    %c0_4 = arith.constant 0 : index
    %c0_5 = arith.constant 0 : index
    %4 = vector.load %arg3[%c0_4, %c0_5] : memref<1x128xf32, #tpu.memory_space<vmem>>, vector<1x128xf32>
    %5 = vector.broadcast %4 : vector<1x128xf32> to vector<16x128xf32>
    %6 = arith.addf %3, %5 : vector<16x128xf32>
    %cst_6 = arith.constant 0.000000e+00 : f32
    %7 = vector.broadcast %cst_6 : f32 to vector<16x128xf32>
    %8 = arith.maximumf %6, %7 : vector<16x128xf32>
    %9 = arith.truncf %8 : vector<16x128xf32> to vector<16x128xbf16>
    %10 = tpu.iota {dimensions = array<i32: 0>} : vector<16x1xi32>
    %c16_i32 = arith.constant 16 : i32
    %c0_i32 = arith.constant 0 : i32
    %11 = arith.cmpi eq, %c16_i32, %c0_i32 : i32
    %c1_i32 = arith.constant 1 : i32
    %12 = arith.select %11, %c1_i32, %c16_i32 : i32
    %13 = vector.broadcast %12 : i32 to vector<16x1xi32>
    %14 = arith.remsi %10, %13 : vector<16x1xi32>
    %c0_i32_7 = arith.constant 0 : i32
    %15 = vector.broadcast %c0_i32_7 : i32 to vector<16x1xi32>
    %16 = arith.cmpi ne, %14, %15 : vector<16x1xi32>
    %c0_i32_8 = arith.constant 0 : i32
    %17 = vector.broadcast %c0_i32_8 : i32 to vector<16x1xi32>
    %18 = arith.cmpi slt, %14, %17 : vector<16x1xi32>
    %c0_i32_9 = arith.constant 0 : i32
    %19 = arith.cmpi slt, %12, %c0_i32_9 : i32
    %20 = vector.broadcast %19 : i1 to vector<16x1xi1>
    %21 = vector.broadcast %20 : vector<16x1xi1> to vector<16x1xi1>
    %22 = arith.xori %18, %21 : vector<16x1xi1>
    %23 = arith.andi %22, %16 : vector<16x1xi1>
    %24 = vector.broadcast %12 : i32 to vector<16x1xi32>
    %25 = arith.addi %14, %24 : vector<16x1xi32>
    %26 = arith.select %23, %25, %14 : vector<16x1xi1>, vector<16x1xi32>
    %c0_10 = arith.constant 0 : index
    %c0_11 = arith.constant 0 : index
    %c0_12 = arith.constant 0 : index
    %27 = vector.load %arg4[%c0_10, %c0_11, %c0_12] : memref<3x128x128xbf16, #tpu.memory_space<vmem>>, vector<1x128x128xbf16>
    %28 = vector.shape_cast %27 : vector<1x128x128xbf16> to vector<128x128xbf16>
    %cst_13 = arith.constant dense<0.000000e+00> : vector<16x128xf32>
    %29 = tpu.matmul %9, %28, %cst_13 {dimension_numbers = #tpu.dot_dimension_numbers<[1], [0], [0], [1], [0, 0, 1, 1], [], []>} : vector<16x128xbf16>, vector<128x128xbf16>, vector<16x128xf32> -> vector<16x128xf32>
    %c1 = arith.constant 1 : index
    %c0_14 = arith.constant 0 : index
    %c0_15 = arith.constant 0 : index
    %30 = vector.load %arg4[%c1, %c0_14, %c0_15] : memref<3x128x128xbf16, #tpu.memory_space<vmem>>, vector<1x128x128xbf16>
    %31 = vector.shape_cast %30 : vector<1x128x128xbf16> to vector<128x128xbf16>
    %cst_16 = arith.constant dense<0.000000e+00> : vector<16x128xf32>
    %32 = tpu.matmul %9, %31, %cst_16 {dimension_numbers = #tpu.dot_dimension_numbers<[1], [0], [0], [1], [0, 0, 1, 1], [], []>} : vector<16x128xbf16>, vector<128x128xbf16>, vector<16x128xf32> -> vector<16x128xf32>
    %c2 = arith.constant 2 : index
    %c0_17 = arith.constant 0 : index
    %c0_18 = arith.constant 0 : index
    %33 = vector.load %arg4[%c2, %c0_17, %c0_18] : memref<3x128x128xbf16, #tpu.memory_space<vmem>>, vector<1x128x128xbf16>
    %34 = vector.shape_cast %33 : vector<1x128x128xbf16> to vector<128x128xbf16>
    %cst_19 = arith.constant dense<0.000000e+00> : vector<16x128xf32>
    %35 = tpu.matmul %9, %34, %cst_19 {dimension_numbers = #tpu.dot_dimension_numbers<[1], [0], [0], [1], [0, 0, 1, 1], [], []>} : vector<16x128xbf16>, vector<128x128xbf16>, vector<16x128xf32> -> vector<16x128xf32>
    %c0_i32_20 = arith.constant 0 : i32
    %36 = vector.broadcast %c0_i32_20 : i32 to vector<16x1xi32>
    %37 = arith.cmpi eq, %26, %36 : vector<16x1xi32>
    %c1_i32_21 = arith.constant 1 : i32
    %38 = tpu.dynamic_rotate %29 by %c1_i32_21 dim 0 : vector<16x128xf32>, i32 -> vector<16x128xf32>
    %cst_22 = arith.constant 0.000000e+00 : f32
    %39 = vector.shape_cast %37 : vector<16x1xi1> to vector<16x1xi1>
    %40 = vector.broadcast %39 : vector<16x1xi1> to vector<16x128xi1>
    %41 = vector.broadcast %cst_22 : f32 to vector<16x128xf32>
    %42 = arith.select %40, %41, %38 : vector<16x128xi1>, vector<16x128xf32>
    %43 = arith.addf %32, %42 : vector<16x128xf32>
    %c15_i32 = arith.constant 15 : i32
    %44 = vector.broadcast %c15_i32 : i32 to vector<16x1xi32>
    %45 = arith.cmpi eq, %26, %44 : vector<16x1xi32>
    %c15_i32_23 = arith.constant 15 : i32
    %46 = tpu.dynamic_rotate %35 by %c15_i32_23 dim 0 : vector<16x128xf32>, i32 -> vector<16x128xf32>
    %cst_24 = arith.constant 0.000000e+00 : f32
    %47 = vector.shape_cast %45 : vector<16x1xi1> to vector<16x1xi1>
    %48 = vector.broadcast %47 : vector<16x1xi1> to vector<16x128xi1>
    %49 = vector.broadcast %cst_24 : f32 to vector<16x128xf32>
    %50 = arith.select %48, %49, %46 : vector<16x128xi1>, vector<16x128xf32>
    %51 = arith.addf %43, %50 : vector<16x128xf32>
    %c0_25 = arith.constant 0 : index
    %c0_26 = arith.constant 0 : index
    %52 = vector.load %arg5[%c0_25, %c0_26] : memref<1x128xf32, #tpu.memory_space<vmem>>, vector<1x128xf32>
    %53 = vector.broadcast %52 : vector<1x128xf32> to vector<16x128xf32>
    %54 = arith.addf %51, %53 : vector<16x128xf32>
    %cst_27 = arith.constant 0.000000e+00 : f32
    %55 = vector.broadcast %cst_27 : f32 to vector<16x128xf32>
    %56 = arith.maximumf %54, %55 : vector<16x128xf32>
    %57 = arith.truncf %56 : vector<16x128xf32> to vector<16x128xbf16>
    %c0_28 = arith.constant 0 : index
    %c0_29 = arith.constant 0 : index
    %58 = vector.load %arg6[%c0_28, %c0_29] : memref<128x128xbf16, #tpu.memory_space<vmem>>, vector<128x128xbf16>
    %cst_30 = arith.constant dense<0.000000e+00> : vector<16x128xf32>
    %59 = tpu.matmul %57, %58, %cst_30 {dimension_numbers = #tpu.dot_dimension_numbers<[1], [0], [0], [1], [0, 0, 1, 1], [], []>} : vector<16x128xbf16>, vector<128x128xbf16>, vector<16x128xf32> -> vector<16x128xf32>
    %c0_31 = arith.constant 0 : index
    %c0_32 = arith.constant 0 : index
    %60 = vector.load %arg7[%c0_31, %c0_32] : memref<1x128xf32, #tpu.memory_space<vmem>>, vector<1x128xf32>
    %61 = vector.broadcast %60 : vector<1x128xf32> to vector<16x128xf32>
    %62 = arith.addf %59, %61 : vector<16x128xf32>
    %63 = arith.extf %1 : vector<16x128xbf16> to vector<16x128xf32>
    %64 = arith.addf %62, %63 : vector<16x128xf32>
    %cst_33 = arith.constant 0.000000e+00 : f32
    %65 = vector.broadcast %cst_33 : f32 to vector<16x128xf32>
    %66 = arith.maximumf %64, %65 : vector<16x128xf32>
    %67 = vector.shape_cast %66 : vector<16x128xf32> to vector<1x16x128xf32>
    %c0_34 = arith.constant 0 : index
    %c0_35 = arith.constant 0 : index
    %c0_36 = arith.constant 0 : index
    %68 = vector.load %arg8[%c0_34, %c0_35, %c0_36] : memref<1x16x128xf32, #tpu.memory_space<vmem>>, vector<1x16x128xf32>
    tpu.vector_store %arg8[%c0_34, %c0_35, %c0_36], %67 {strides = array<i32>} : memref<1x16x128xf32, #tpu.memory_space<vmem>>, vector<1x16x128xf32>,
    return
  }
  func.func @transform_0(%arg0: i32) -> (i32, i32, i32) {
    %c0_i32 = arith.constant 0 : i32
    %c0_i32_0 = arith.constant 0 : i32
    %c0_i32_1 = arith.constant 0 : i32
    return %arg0, %c0_i32, %c0_i32_0 : i32, i32, i32
  }
  func.func @transform_1(%arg0: i32) -> (i32, i32) {
    %c0_i32 = arith.constant 0 : i32
    %c0_i32_0 = arith.constant 0 : i32
    %c0_i32_1 = arith.constant 0 : i32
    return %c0_i32, %c0_i32_0 : i32, i32
  }
  func.func @transform_2(%arg0: i32) -> (i32, i32) {
    %c0_i32 = arith.constant 0 : i32
    %c0_i32_0 = arith.constant 0 : i32
    %c0_i32_1 = arith.constant 0 : i32
    return %c0_i32, %c0_i32_0 : i32, i32
  }
  func.func @transform_3(%arg0: i32) -> (i32, i32, i32) {
    %c0_i32 = arith.constant 0 : i32
    %c0_i32_0 = arith.constant 0 : i32
    %c0_i32_1 = arith.constant 0 : i32
    %c0_i32_2 = arith.constant 0 : i32
    return %c0_i32, %c0_i32_0, %c0_i32_1 : i32, i32, i32
  }
  func.func @transform_4(%arg0: i32) -> (i32, i32) {
    %c0_i32 = arith.constant 0 : i32
    %c0_i32_0 = arith.constant 0 : i32
    %c0_i32_1 = arith.constant 0 : i32
    return %c0_i32, %c0_i32_0 : i32, i32
  }
  func.func @transform_5(%arg0: i32) -> (i32, i32) {
    %c0_i32 = arith.constant 0 : i32
    %c0_i32_0 = arith.constant 0 : i32
    %c0_i32_1 = arith.constant 0 : i32
    return %c0_i32, %c0_i32_0 : i32, i32
  }
  func.func @transform_6(%arg0: i32) -> (i32, i32) {
    %c0_i32 = arith.constant 0 : i32
    %c0_i32_0 = arith.constant 0 : i32
    %c0_i32_1 = arith.constant 0 : i32
    return %c0_i32, %c0_i32_0 : i32, i32
  }
  func.func @transform_7(%arg0: i32) -> (i32, i32, i32) {
    %c0_i32 = arith.constant 0 : i32
    %c0_i32_0 = arith.constant 0 : i32
    %c0_i32_1 = arith.constant 0 : i32
    return %arg0, %c0_i32, %c0_i32_0 : i32, i32, i32
  }
}

</mosaic_0001>

<bundles_post_ra>
// kernel: tpu_custom_call.1
= control target key start
LH: loop header
LB: loop body
LE: loop exit
PB: predicated region body
PF: predicated region fallthrough
CT: control target
= control target key end

     0   :  { %12 = vsyncpa [#allocation3], 0  ;;  %s2001_s0 = inlined_call_operand.hbm [shape: bf16[2,16,128], index: 0, kind: input, shape index: {}]   ;;  %s2002_s1 = inlined_call_operand.hbm [shape: bf16[128,128], index: 1, kind: input, shape index: {}]   ;;  %s2003_s2 = inlined_call_operand.vmem [shape: f32[1,128], index: 2, kind: input, shape index: {}]   ;;  %s2004_s3 = inlined_call_operand.hbm [shape: bf16[3,128,128], index: 3, kind: input, shape index: {}]   ;;  %s2005_s4 = inlined_call_operand.vmem [shape: f32[1,128], index: 4, kind: input, shape index: {}]   ;;  %s2006_s5 = inlined_call_operand.hbm [shape: bf16[128,128], index: 5, kind: input, shape index: {}]   ;;  %s2007_s6 = inlined_call_operand.vmem [shape: f32[1,128], index: 6, kind: input, shape index: {}]   ;;  %s2008_s7 = inlined_call_operand.hbm [shape: f32[2,16,128], index: 7, kind: output, shape index: {}]  }
   0x1   :  { %14 = vsyncpa [#allocation3 + $0x1], 0 }
   0x2   :  { %15 = vsyncpa [#allocation6], 0 }
   0x3   :  { %16 = vsyncpa [#allocation9], 0 }
   0x4   :  { %17 = vsyncpa [#allocation4], 0 }
   0x5   :  { %19 = vsyncpa [#allocation4 + $0x1], 0  ;;  %s1662_s24 = smov 0   ;;  %s1664_s25 = smov 0  }
   0x6   :  { %s1666_s26 = smov 0   ;;  %s1668_s27 = smov 0  }
   0x7 LB: > { %s1683_s28 = sadd.s32 4294967295, %s1609_s27   ;;  %s1085_s29 = sadd.s32 4294967294, %s1609_s27   ;;  %s1609_s27 = sphi %s1668_s27, %s2034_s27   ;;  %s1605_s26 = sphi %s1666_s26, %s2033_s26   ;;  %s1601_s25 = sphi %s1664_s25, %s2032_s25   ;;  %s1597_s24 = sphi %s1662_s24, %s2031_s24  }
   0x8   : > { %p45_p0 = scmp.ne.s32.totalorder %s1601_s25, %s1597_s24  ;;  %p2009_p1 = scmp.eq.s32.totalorder %s1683_s28, 0 }
   0x9   : > { %p201_p3 = scmp.eq.s32.totalorder %s1085_s29, 1  ;;  %p1086_p5 = scmp.ge.s32.totalorder %s1609_s27, 1 }
   0xa   : > { %p1692_p4 = por %p2009_p1, %p45_p0  ;;  %p208_p7 = scmp.lt.s32.totalorder %s1609_s27, 3 }
   0xb   : > { %p1697_p6 = por %p201_p3, %p45_p0  ;;  %s1611_s10 = smov [#allocation5]  }
   0xc   : > { %s2013_s30 = scalar_select %p1692_p4, 1, 0 }
   0xd   : > { %s2014_s8 = scalar_select %p1697_p6, 1, 0 }
   0xe   : > { %p1702_p8 = pnand %p1086_p5, %p208_p7  ;;  %s220_s11 = sshll.u32 %s1611_s10, 4  ;;  %s1706_s11 = int_to_ptr.vmem [resolvable:$true] %s220_s11 }
   0xf   : > { %2015 = sst [smem:[#allocation15_spill]] %s2014_s8  ;;  %s1612_s13 = smov [#allocation7]  }
  0x10   : > { %s2016_s9 = scalar_select %p1702_p8, 1, 0 }
  0x11   : > { %p1312_p9 = pneg %p1702_p8  ;;  %s236_s14 = sshll.u32 %s1612_s13, 4  ;;  %s1717_s14 = int_to_ptr.vmem [resolvable:$true] %s236_s14 }
  0x12   : > { %s1613_s15 = smov [#allocation8]   ;;  %s1421_s19 = scalar_lea.hbm %s2002_s1, 1024 }
  0x13   : > { %p1713_p11 = pnand %p1312_p9, %p2009_p1  ;;  %s1719_s16 = sshll.u32 %s1613_s15, 4  ;;  %s253_s16 = int_to_ptr.vmem [resolvable:$true] %s1719_s16 }
  0x14   : > { %p1422_p12 = scmp.ne.s32.totalorder %s2002_s1, %s1421_s19  ;;  %p1428_p5 = scmp.lt.u32.totalorder %s1421_s19, %s2002_s1 }
  0x15   : > { %p1729_p13 = pneg %p1713_p11 }
  0x17   : > { %p1424_p0 = pnand %p1729_p13, %p1422_p12 }
  0x19   : > { %p1425_p3 = pneg %p1424_p0 }
  0x1b   : > { %p1430_p7 = pnand %p1428_p5, %p1425_p3 }
  0x1d   : > { %1433 = shalt.err (!%p1430_p7)
}
  0x1e   : > { %s1434_s10 = scalar_lea.vmem %s1706_s11, 1024  ;;  %p1442_p2 = scmp.lt.s32.totalorder %s1706_s11, %s1706_s11 }
  0x1f   : > { %p1435_p9 = scmp.ne.s32.totalorder %s1706_s11, %s1434_s10  ;;  %p1443_p6 = scmp.lt.s32.totalorder %s1434_s10, %s1434_s10 }
  0x21   : > { %p1437_p10 = pnand %p1435_p9, %p1729_p13  ;;  %p1444_p12 = por %p1443_p6, %p1442_p2 }
  0x23   : > { %p1438_p1 = pneg %p1437_p10 }
  0x25   : > { %p1445_p0 = pnand %p1444_p12, %p1438_p1 }
  0x27   : > { %1448 = shalt.err (!%p1445_p0)
}
  0x28   : > { %s1614_s13 = smov 64   ;;  %s1615_s15 = smov 4  }
  0x29   : > { %1315 = dma.hbm_to_vmem [thread:$0]  (!%p1713_p11), %s2002_s1, 1024, %s1706_s11, [#allocation6], %s1614_s13, %s1614_s13, %s1615_s15  }
  0x2a   : > { %s1449_s21 = scalar_lea.hbm %s2004_s3, 3072 }
  0x2b   : > { %p1450_p1 = scmp.ne.s32.totalorder %s2004_s3, %s1449_s21  ;;  %p1456_p10 = scmp.lt.u32.totalorder %s1449_s21, %s2004_s3 }
  0x2d   : > { %p1452_p2 = pnand %p1450_p1, %p1729_p13 }
  0x2f   : > { %p1453_p6 = pneg %p1452_p2 }
  0x31   : > { %p1458_p3 = pnand %p1456_p10, %p1453_p6 }
  0x33   : > { %1461 = shalt.err (!%p1458_p3)
}
  0x34   : > { %s1462_s11 = scalar_lea.vmem %s1717_s14, 3072  ;;  %p1470_p12 = scmp.lt.s32.totalorder %s1717_s14, %s1717_s14 }
  0x35   : > { %p1463_p5 = scmp.ne.s32.totalorder %s1717_s14, %s1462_s11  ;;  %p1471_p0 = scmp.lt.s32.totalorder %s1462_s11, %s1462_s11 }
  0x37   : > { %p1465_p7 = pnand %p1463_p5, %p1729_p13  ;;  %p1472_p1 = por %p1471_p0, %p1470_p12 }
  0x39   : > { %p1466_p9 = pneg %p1465_p7 }
  0x3b   : > { %p1473_p2 = pnand %p1472_p1, %p1466_p9 }
  0x3d   : > { %1476 = shalt.err (!%p1473_p2)
}
  0x3e   : > { %1318 = dma.hbm_to_vmem [thread:$0]  (!%p1713_p11), %s2004_s3, 3072, %s1717_s14, [#allocation6], %s1614_s13, %s1614_s13, %s1615_s15  }
  0x3f   : > { %s1477_s20 = scalar_lea.hbm %s2006_s5, 1024 }
  0x40   : > { %p1478_p6 = scmp.ne.s32.totalorder %s2006_s5, %s1477_s20  ;;  %p1484_p5 = scmp.lt.u32.totalorder %s1477_s20, %s2006_s5 }
  0x42   : > { %p1480_p10 = pnand %p1478_p6, %p1729_p13 }
  0x44   : > { %p1481_p3 = pneg %p1480_p10 }
  0x46   : > { %p1486_p7 = pnand %p1484_p5, %p1481_p3 }
  0x48   : > { %1489 = shalt.err (!%p1486_p7)
}
  0x49   : > { %s1490_s11 = scalar_lea.vmem %s253_s16, 1024  ;;  %p1498_p1 = scmp.lt.s32.totalorder %s253_s16, %s253_s16 }
  0x4a   : > { %p1491_p9 = scmp.ne.s32.totalorder %s253_s16, %s1490_s11  ;;  %p1499_p2 = scmp.lt.s32.totalorder %s1490_s11, %s1490_s11 }
  0x4c   : > { %p1493_p12 = pnand %p1491_p9, %p1729_p13  ;;  %p1500_p4 = por %p1499_p2, %p1498_p1 }
  0x4e   : > { %p1494_p0 = pneg %p1493_p12 }
  0x50   : > { %p1501_p8 = pnand %p1500_p4, %p1494_p0 }
  0x52   : > { %1504 = shalt.err (!%p1501_p8)
}
  0x53   : > { %1321 = dma.hbm_to_vmem [thread:$0]  (!%p1713_p11), %s2006_s5, 1024, %s253_s16, [#allocation9], %s1614_s13, %s1614_s13, %s1615_s15  }
  0x54   : > { %s1802_s22 = sadd.s32 1, %s1609_s27   ;;  %s32_s17 = sadd.s32 1, %s1605_s26 }
  0x55   : > { %s29_s12 = ssub.s32 %s1609_s27, %s1802_s22  ;;  %p39_p8 = scmp.ne.s32.totalorder %s1605_s26, %s1601_s25 }
  0x56   : > { %p30_p4 = scmp.eq.s32.totalorder %s29_s12, 0  ;;  %p40_p13 = scmp.eq.s32.totalorder %s1609_s27, 0 }
  0x57   : > { %p1333_p6 = scmp.lt.s32.totalorder %s1609_s27, 2  ;;  %p2019_p3 = scmp.eq.s32.totalorder %s1683_s28, 1 }
  0x58   : > { %s1812_s18 = scalar_select %p30_p4, %s1605_s26, %s32_s17  }
  0x59   : > { %p41_p10 = por %p40_p13, %p39_p8  ;;  %p1816_p5 = por %p2019_p3, %p39_p8 }
  0x5a   : > { %s269_s20 = sand.u32 1, %s1605_s26   ;;  %s1149_s21 = sshll.u32 %s1609_s27, 7 }
  0x5b   : > { %s1091_s16 = sshll.u32 %s269_s20, 3  ;;  %s1825_s10 = scalar_lea.hbm %s2001_s0, %s1149_s21 }
  0x5c   : > { %s273_s11 = scalar_lea.vmem [#allocation2], %s1091_s16  ;;  %p1827_p11 = pnand %p1333_p6, %p41_p10 }
  0x5d   : > { %s280_s14 = sshll.u32 %s273_s11, 4  ;;  %s1833_s12 = scalar_lea.sflag [#allocation3], %s269_s20  ;;  %s1831_s14 = int_to_ptr.vmem [resolvable:$true] %s280_s14 }
  0x5e   : > { %s1505_s17 = scalar_lea.hbm %s1825_s10, 128  ;;  %p1507_p9 = pneg %p1827_p11 }
  0x5f   : > { %p1506_p7 = scmp.ne.s32.totalorder %s1825_s10, %s1505_s17  ;;  %s1510_s23 = scalar_lea.hbm %s2001_s0, 256 }
  0x60   : > { %p1511_p1 = scmp.lt.u32.totalorder %s1825_s10, %s2001_s0  ;;  %p1512_p2 = scmp.lt.u32.totalorder %s1510_s23, %s1505_s17 }
  0x61   : > { %p1508_p12 = pnand %p1507_p9, %p1506_p7  ;;  %p1514_p8 = scmp.lt.u32.totalorder %s1505_s17, %s1825_s10 }
  0x62   : > { %p1513_p4 = por %p1512_p2, %p1511_p1 }
  0x63   : > { %p1509_p0 = pneg %p1508_p12 }
  0x64   : > { %p1515_p13 = por %p1514_p8, %p1513_p4 }
  0x66   : > { %p1516_p6 = pnand %p1515_p13, %p1509_p0 }
  0x68   : > { %1519 = shalt.err (!%p1516_p6)
}
  0x69   : > { %s1520_s20 = scalar_lea.vmem %s1831_s14, 128  ;;  %s1616_s21 = smov [#allocation2]  }
  0x6a   : > { %p1521_p10 = scmp.ne.s32.totalorder %s1831_s14, %s1520_s20  ;;  %s1525_s16 = sshll.u32 %s1616_s21, 4  ;;  %s1526_s16 = int_to_ptr.vmem [resolvable:$false] %s1525_s16 }
  0x6b   : > { %s1527_s29 = scalar_lea.vmem %s1526_s16, 256  ;;  %p1528_p12 = scmp.lt.s32.totalorder %s1831_s14, %s1526_s16 }
  0x6c   : > { %p1523_p3 = pnand %p1521_p10, %p1507_p9  ;;  %p1529_p1 = scmp.lt.s32.totalorder %s1527_s29, %s1520_s20 }
  0x6e   : > { %p1524_p7 = pneg %p1523_p3  ;;  %p1530_p2 = por %p1529_p1, %p1528_p12 }
  0x70   : > { %p1531_p4 = pnand %p1530_p2, %p1524_p7 }
  0x72   : > { %1534 = shalt.err (!%p1531_p4)
}
  0x73   : > { %1325 = dma.hbm_to_vmem [thread:$0]  (!%p1827_p11), %s1825_s10, 128, %s1831_s14, %s1833_s12, %s1614_s13, %s1614_s13, %s1615_s15  }
  0x74   : > { %p2022_p9 = scmp.ne.s32.totalorder %s2016_s9, 0 }
  0x75   : > { %s1867_s17 = sand.u32 (!%p2022_p9), 1, %s1601_s25   ;;  %p2023_p0 = scmp.ne.s32.totalorder (!%p2022_p9), %s2013_s30, 0 }
  0x76   : > { %292 = sbr.rel (%p2022_p9) target bundleno = 878 (0x36e), region = 48  ;;  %s1095_s23 = sshll.u32 (!%p2022_p9), %s1867_s17, 3 }
  0x77   : > { %s295_s11 = scalar_lea.sflag (!%p2022_p9), [#allocation3], %s1867_s17  ;;  %s1871_s20 = scalar_lea.vmem (!%p2022_p9), [#allocation2], %s1095_s23 }
  0x7d   : > { %1580 = dma.done.wait (%p2023_p0), %s295_s11, 128  }
  0x7e   : > { %1582 = vsyncadd (%p2023_p0), %s295_s11, 4294967168  ;;  %p2024_p11 = scmp.eq.s32.totalorder %s1683_s28, 0 }
  0x80   : > { %1584 = dma.done.wait (%p2024_p11), [#allocation6], 4096   ;;  %p2025_p8 = pmov %p2024_p11 }
  0x82   : > { %1586 = vsyncadd (%p2025_p8), [#allocation6], 4294963200  ;;  %p2026_p13 = pmov %p2025_p8 }
  0x83   : > { %p2027_p6 = pmov %p2025_p8 }
  0x84   : > { %1588 = dma.done.wait (%p2026_p13), [#allocation9], 1024  }
  0x85   : > { %1590 = vsyncadd (%p2027_p6), [#allocation9], 4294966272  ;;  %v1617_v0 = vmov 0.0   ;;  %vm1618_vm0 = vmmov 0   ;;  %v1379_v1 = vld [vmem:[#allocation5] sm:$0xff]   ;;  %v1380_v2 = vld [vmem:[#allocation5 + $0x8] sm:$0xff]   ;;  %v465_v52 = vlaneseq }
  0x86   : > { %1196 = vmatprep.subr.bf16.mxu0 %v1617_v0  ;;  %1212 = vmatprep.mubr.msk.bf16.mxu0 %vm1618_vm0, %v1617_v0  ;;  %v1381_v3 = vld [vmem:[#allocation5 + $0x10] sm:$0xff]   ;;  %v1388_v4 = vld [vmem:[#allocation7] sm:$0xff]   ;;  %v1382_v5 = vld [vmem:[#allocation5 + $0x18] sm:$0xff]   ;;  %s1099_s10 = sshll.u32 %s1867_s17, 4  ;;  %s1150_s16 = sshll.u32 %s1683_s28, 8 }
  0x87   : > { %1216 = vmatprep.subr.bf16.mxu1 %v1617_v0  ;;  %1232 = vmatprep.mubr.msk.bf16.mxu1 %vm1618_vm0, %v1617_v0  ;;  %v1390_v6 = vld [vmem:[#allocation7 + $0x8] sm:$0xff]   ;;  %v1383_v7 = vld [vmem:[#allocation5 + $0x20] sm:$0xff]   ;;  %v1392_v8 = vld [vmem:[#allocation7 + $0x10] sm:$0xff]   ;;  %v466_v55 = vshrl.u32 %v465_v52, 7  ;;  %s340_s12 = scalar_lea.vmem [#allocation10], %s1099_s10  ;;  %s1957_s11 = scalar_lea.hbm %s2008_s7, %s1150_s16 }
  0x88   : > { %1197 = vmatpush3.bf16.msra.mxu0 %v1379_v1  ;;  %1217 = vmatpush3.bf16.msra.mxu1 %v1388_v4  ;;  %v1384_v9 = vld [vmem:[#allocation5 + $0x28] sm:$0xff]   ;;  %v1394_v10 = vld [vmem:[#allocation7 + $0x18] sm:$0xff]   ;;  %v1385_v11 = vld [vmem:[#allocation5 + $0x30] sm:$0xff]   ;;  %s983_s21 = sshll.u32 %s340_s12, 4  ;;  %s1619_s28 = smov [#allocation10]   ;;  %s1952_s21 = int_to_ptr.vmem [resolvable:$true] %s983_s21 }
  0x89   : > { %1198 = vmatprep.subr.bf16.mxu0 %v1617_v0  ;;  %1218 = vmatprep.subr.bf16.mxu1 %v1617_v0  ;;  %v1396_v12 = vld [vmem:[#allocation7 + $0x20] sm:$0xff]   ;;  %v1386_v13 = vld [vmem:[#allocation5 + $0x38] sm:$0xff]   ;;  %v1398_v15 = vld [vmem:[#allocation7 + $0x28] sm:$0xff]   ;;  %vm724_vm1 = vcmp.lt.s32.totalorder %v466_v55, 1  ;;  %vm826_vm2 = vcmp.lt.s32.totalorder %v466_v55, 7  ;;  %s1535_s30 = scalar_lea.vmem %s1952_s21, 256 }
  0x8a   : > { %v1901_v14 = vld [vmem:[%s1871_s20] sm:$0xff]   ;;  %v1389_v16 = vld [vmem:[#allocation7 + $0x80] sm:$0xff]   ;;  %v1391_v17 = vld [vmem:[#allocation7 + $0x88] sm:$0xff]   ;;  %s970_s20 = scalar_lea.sflag [#allocation4], %s1867_s17  ;;  %p1536_p10 = scmp.ne.s32.totalorder %s1952_s21, %s1535_s30 }
  0x8b   : > { %v1393_v18 = vld [vmem:[#allocation7 + $0x90] sm:$0xff]   ;;  %v1395_v19 = vld [vmem:[#allocation7 + $0x98] sm:$0xff]   ;;  %v1397_v20 = vld [vmem:[#allocation7 + $0xa0] sm:$0xff]   ;;  %s1539_s9 = sshll.u32 %s1619_s28, 4  ;;  %s1540_s9 = int_to_ptr.vmem [resolvable:$false] %s1539_s9 }
  0x8c   : > { %1199 = vmatpush3.bf16.msra.mxu0 %v1380_v2  ;;  %1219 = vmatpush3.bf16.msra.mxu1 %v1390_v6  ;;  %v1399_v21 = vld [vmem:[#allocation7 + $0xa8] sm:$0xff]   ;;  %v1400_v22 = vld [vmem:[#allocation7 + $0x30] sm:$0xff]   ;;  %v1402_v24 = vld [vmem:[#allocation7 + $0x38] sm:$0xff]   ;;  %v472_v6 = vand.u32 15, %v466_v55  ;;  %p1537_p3 = pnand %p1536_p10, %p1816_p5  ;;  %s1541_s13 = scalar_lea.vmem %s1540_s9, 512 }
  0x8d   : > { %1200 = vmatprep.subr.bf16.mxu0 %v1617_v0  ;;  %1220 = vmatprep.subr.bf16.mxu1 %v1617_v0  ;;  %v1401_v23 = vld [vmem:[#allocation7 + $0xb0] sm:$0xff]   ;;  %v1403_v25 = vld [vmem:[#allocation7 + $0xb8] sm:$0xff]   ;;  %v1404_v35 = vld [vmem:[#allocation7 + $0x40] sm:$0xff]   ;;  %p1542_p12 = scmp.lt.s32.totalorder %s1952_s21, %s1540_s9  ;;  %p1543_p1 = scmp.lt.s32.totalorder %s1541_s13, %s1535_s30 }
  0x8e   : > { %v1100_v26 = vld [vmem:[%s2003_s2] ss:$0 sm:$0xff]  ;;  %v1405_v37 = vld [vmem:[#allocation7 + $0x48] sm:$0xff]   ;;  %v1407_v39 = vld [vmem:[#allocation7 + $0x58] sm:$0xff]   ;;  %vm720_vm3 = vcmp.eq.s32.totalorder %v472_v6, 0  ;;  %p1538_p7 = pneg %p1537_p3 }
  0x8f   : > { %v1406_v38 = vld [vmem:[#allocation7 + $0x50] sm:$0xff]   ;;  %v1408_v40 = vld [vmem:[#allocation7 + $0x60] sm:$0xff]   ;;  %v1409_v41 = vld [vmem:[#allocation7 + $0x68] sm:$0xff]   ;;  %p1544_p2 = por %p1543_p1, %p1542_p12 }
  0x90   : > { %1201 = vmatpush3.bf16.msra.mxu0 %v1381_v3  ;;  %1221 = vmatpush3.bf16.msra.mxu1 %v1392_v8  ;;  %v1410_v42 = vld [vmem:[#allocation7 + $0x70] sm:$0xff]   ;;  %v1411_v43 = vld [vmem:[#allocation7 + $0x78] sm:$0xff]   ;;  %v1412_v44 = vld [vmem:[#allocation8] sm:$0xff]  }
  0x91   : > { %1202 = vmatprep.subr.bf16.mxu0 %v1617_v0  ;;  %1222 = vmatprep.subr.bf16.mxu1 %v1617_v0  ;;  %v1413_v45 = vld [vmem:[#allocation8 + $0x8] sm:$0xff]   ;;  %v1414_v46 = vld [vmem:[#allocation8 + $0x10] sm:$0xff]   ;;  %v1415_v47 = vld [vmem:[#allocation8 + $0x18] sm:$0xff]   ;;  %p1545_p4 = pnand %p1544_p2, %p1538_p7 }
  0x92   : > { %v1416_v48 = vld [vmem:[#allocation8 + $0x20] sm:$0xff]   ;;  %v1417_v49 = vld [vmem:[#allocation8 + $0x28] sm:$0xff]   ;;  %v1418_v50 = vld [vmem:[#allocation8 + $0x30] sm:$0xff]  }
  0x93   : > { %v1419_v51 = vld [vmem:[#allocation8 + $0x38] sm:$0xff]  }
  0x94   : > { %1203 = vmatpush3.bf16.msra.mxu0 %v1382_v5  ;;  %1223 = vmatpush3.bf16.msra.mxu1 %v1394_v10 }
  0x95   : > { %1204 = vmatprep.subr.bf16.mxu0 %v1617_v0  ;;  %1224 = vmatprep.subr.bf16.mxu1 %v1617_v0 }
  0x98   : > { %1205 = vmatpush3.bf16.msra.mxu0 %v1383_v7  ;;  %1225 = vmatpush3.bf16.msra.mxu1 %v1396_v12  ;;  %v467_v7 = vadd.s32 8, %v466_v55 }
  0x99   : > { %1206 = vmatprep.subr.bf16.mxu0 %v1617_v0  ;;  %1226 = vmatprep.subr.bf16.mxu1 %v1617_v0 }
  0x9a   : > { %v479_v8 = vand.u32 15, %v467_v7 }
  0x9c   : > { %1207 = vmatpush3.bf16.msra.mxu0 %v1384_v9  ;;  %1227 = vmatpush3.bf16.msra.mxu1 %v1398_v15  ;;  %vm823_vm4 = vcmp.eq.s32.totalorder %v479_v8, 15 }
  0x9d   : > { %1208 = vmatprep.subr.bf16.mxu0 %v1617_v0  ;;  %1228 = vmatprep.subr.bf16.mxu1 %v1617_v0 }
  0xa0   : > { %1209 = vmatpush3.bf16.msra.mxu0 %v1385_v11  ;;  %1229 = vmatpush3.bf16.msra.mxu1 %v1400_v22 }
  0xa1   : > { %1210 = vmatprep.subr.bf16.mxu0 %v1617_v0  ;;  %1230 = vmatprep.subr.bf16.mxu1 %v1617_v0 }
  0xa4   : > { %1211 = vmatpush3.bf16.msra.mxu0 %v1386_v13  ;;  %1231 = vmatpush3.bf16.msra.mxu1 %v1402_v24  ;;  %v1134_v13 = vld [vmem:[%s2005_s4] ss:$0 sm:$0xff] }
  0xa5   : > { %1236 = vmatprep.subr.bf16.mxu0 %v1617_v0  ;;  %1256 = vmatprep.subr.bf16.mxu1 %v1617_v0 }
  0xa7   : > { %1213 = vmatmul.mubr.bf16.vlgmr.msra.gmra.mrb[0].mxu0 %v1901_v14 }
  0xa8   : > { %1237 = vmatpush3.bf16.msra.mxu0 %v1389_v16  ;;  %1252 = vmatprep.mubr.msk.bf16.mxu0 %vm1618_vm0, %v1617_v0 }
  0xa9   : > { %1238 = vmatprep.subr.bf16.mxu0 %v1617_v0 }
  0xac   : > { %1239 = vmatpush3.bf16.msra.mxu0 %v1391_v17 }
  0xad   : > { %1240 = vmatprep.subr.bf16.mxu0 %v1617_v0 }
  0xb0   : > { %1241 = vmatpush3.bf16.msra.mxu0 %v1393_v18 }
  0xb1   : > { %1242 = vmatprep.subr.bf16.mxu0 %v1617_v0 }
  0xb4   : > { %1243 = vmatpush3.bf16.msra.mxu0 %v1395_v19 }
  0xb5   : > { %1244 = vmatprep.subr.bf16.mxu0 %v1617_v0 }
  0xb8   : > { %1245 = vmatpush3.bf16.msra.mxu0 %v1397_v20 }
  0xb9   : > { %1246 = vmatprep.subr.bf16.mxu0 %v1617_v0 }
  0xbc   : > { %1247 = vmatpush3.bf16.msra.mxu0 %v1399_v21 }
  0xbd   : > { %1248 = vmatprep.subr.bf16.mxu0 %v1617_v0 }
  0xc0   : > { %1249 = vmatpush3.bf16.msra.mxu0 %v1401_v23 }
  0xc1   : > { %1250 = vmatprep.subr.bf16.mxu0 %v1617_v0 }
  0xc4   : > { %1251 = vmatpush3.bf16.msra.mxu0 %v1403_v25 }
  0xc5   : > { %1276 = vmatprep.subr.bf16.mxu0 %v1617_v0 }
 0x17a   : > { %v455_v27 = vpop.f32.mrb[0].mxu0 }
 0x17b   : > { %v456_v28 = vadd.f32 %v1100_v26, %v455_v27  ;;  %v1214_v29 = vpop.f32.mrb[1].mxu0  ;;  %v961_v27 = vunpack.c.l.bf16 %v1901_v14 }
 0x17c   : > { %v458_v30 = vpop.f32.mrb[2].mxu0 }
 0x17d   : > { %v459_v31 = vadd.f32 %v1100_v26, %v458_v30  ;;  %v1215_v32 = vpop.f32.mrb[3].mxu0  ;;  %v462_v33 = vmax.f32 %v456_v28, 0.0  ;;  %v1135_v26 = vld [vmem:[%s2007_s6] ss:$0 sm:$0xff] }
 0x17f   : > { %v463_v34 = vmax.f32 %v459_v31, 0.0  ;;  %v962_v31 = vunpack.c.h.bf16 %v1901_v14 }
 0x181   : > { %v464_v36 = vpack.c.bf16 %v463_v34, %v462_v33 }
 0x183   : > { %1233 = vmatmul.mubr.bf16.vlgmr.msra.gmra.mrb[0].mxu1 %v464_v36  ;;  %1253 = vmatmul.mubr.bf16.vlgmr.msra.gmra.mrb[4].mxu0 %v464_v36 }
 0x184   : > { %1257 = vmatpush3.bf16.msra.mxu1 %v1404_v35  ;;  %1272 = vmatprep.mubr.msk.bf16.mxu1 %vm1618_vm0, %v1617_v0 }
 0x185   : > { %1258 = vmatprep.subr.bf16.mxu1 %v1617_v0  ;;  %1292 = vmatprep.mubr.msk.bf16.mxu0 %vm1618_vm0, %v1617_v0 }
 0x186   : > { %1277 = vmatpush3.bf16.msra.mxu0 %v1412_v44 }
 0x187   : > { %1278 = vmatprep.subr.bf16.mxu0 %v1617_v0 }
 0x188   : > { %1259 = vmatpush3.bf16.msra.mxu1 %v1405_v37 }
 0x189   : > { %1260 = vmatprep.subr.bf16.mxu1 %v1617_v0 }
 0x18a   : > { %1279 = vmatpush3.bf16.msra.mxu0 %v1413_v45 }
 0x18b   : > { %1280 = vmatprep.subr.bf16.mxu0 %v1617_v0 }
 0x18c   : > { %1261 = vmatpush3.bf16.msra.mxu1 %v1406_v38 }
 0x18d   : > { %1262 = vmatprep.subr.bf16.mxu1 %v1617_v0 }
 0x18e   : > { %1281 = vmatpush3.bf16.msra.mxu0 %v1414_v46 }
 0x18f   : > { %1282 = vmatprep.subr.bf16.mxu0 %v1617_v0 }
 0x190   : > { %1263 = vmatpush3.bf16.msra.mxu1 %v1407_v39 }
 0x191   : > { %1264 = vmatprep.subr.bf16.mxu1 %v1617_v0 }
 0x192   : > { %1283 = vmatpush3.bf16.msra.mxu0 %v1415_v47 }
 0x193   : > { %1284 = vmatprep.subr.bf16.mxu0 %v1617_v0 }
 0x194   : > { %1265 = vmatpush3.bf16.msra.mxu1 %v1408_v40 }
 0x195   : > { %1266 = vmatprep.subr.bf16.mxu1 %v1617_v0 }
 0x196   : > { %1285 = vmatpush3.bf16.msra.mxu0 %v1416_v48 }
 0x197   : > { %1286 = vmatprep.subr.bf16.mxu0 %v1617_v0 }
 0x198   : > { %1267 = vmatpush3.bf16.msra.mxu1 %v1409_v41 }
 0x199   : > { %1268 = vmatprep.subr.bf16.mxu1 %v1617_v0 }
 0x19a   : > { %1287 = vmatpush3.bf16.msra.mxu0 %v1417_v49 }
 0x19b   : > { %1288 = vmatprep.subr.bf16.mxu0 %v1617_v0 }
 0x19c   : > { %1269 = vmatpush3.bf16.msra.mxu1 %v1410_v42 }
 0x19d   : > { %1270 = vmatprep.subr.bf16.mxu1 %v1617_v0 }
 0x19e   : > { %1289 = vmatpush3.bf16.msra.mxu0 %v1418_v50 }
 0x19f   : > { %1290 = vmatprep.subr.bf16.mxu0 %v1617_v0 }
 0x1a0   : > { %1271 = vmatpush3.bf16.msra.mxu1 %v1411_v43 }
 0x1a2   : > { %1291 = vmatpush3.bf16.msra.mxu0 %v1419_v51 }
 0x1a3   : > { %1273 = vmatmul.mubr.bf16.vlgmr.msra.gmra.mrb[4].mxu1 %v464_v36 }
 0x256   : > { %v590_v53 = vpop.f32.mrb[0].mxu1  ;;  %v713_v54 = vpop.f32.mrb[4].mxu0 }
 0x257   : > { %v1234_v56 = vpop.f32.mrb[1].mxu1  ;;  %v1254_v57 = vpop.f32.mrb[5].mxu0  ;;  %v722_v60 = vrot.slane %v590_v53, 7  ;;  %v824_v61 = vrot.slane %v713_v54, 1 }
 0x258   : > { %v593_v58 = vpop.f32.mrb[2].mxu1  ;;  %v716_v59 = vpop.f32.mrb[6].mxu0 }
 0x259   : > { %v723_v62 = vrot.slane %v593_v58, 7  ;;  %v825_v63 = vrot.slane %v716_v59, 1  ;;  %v1235_v1 = vpop.f32.mrb[3].mxu1  ;;  %v1255_v2 = vpop.f32.mrb[7].mxu0 }
 0x25b   : > { %v726_v3 = vsel %vm724_vm1, %v723_v62, %v722_v60  ;;  %v827_v0 = vsel %vm826_vm2, %v824_v61, %v825_v63  ;;  %v725_v4 = vsel %vm724_vm1, %v722_v60, %v723_v62  ;;  %v828_v5 = vsel %vm826_vm2, %v825_v63, %v824_v61 }
 0x25c   : > { %v731_v9 = vsel %vm720_vm3, 0.0, %v726_v3  ;;  %v834_v19 = vsel %vm823_vm4, 0.0, %v828_v5 }
 0x276   : > { %v815_v10 = vpop.f32.mrb[4].mxu1 }
 0x277   : > { %v816_v11 = vadd.f32 %v815_v10, %v731_v9  ;;  %v1274_v12 = vpop.f32.mrb[5].mxu1 }
 0x278   : > { %v818_v15 = vpop.f32.mrb[6].mxu1 }
 0x279   : > { %v835_v16 = vadd.f32 %v827_v0, %v816_v11  ;;  %v819_v17 = vadd.f32 %v818_v15, %v725_v4  ;;  %v1275_v18 = vpop.f32.mrb[7].mxu1 }
 0x27b   : > { %v844_v20 = vadd.f32 %v1134_v13, %v835_v16  ;;  %v836_v21 = vadd.f32 %v834_v19, %v819_v17 }
 0x27d   : > { %v845_v22 = vadd.f32 %v1134_v13, %v836_v21  ;;  %v846_v23 = vmax.f32 %v844_v20, 0.0 }
 0x27f   : > { %v847_v24 = vmax.f32 %v845_v22, 0.0 }
 0x281   : > { %v848_v25 = vpack.c.bf16 %v847_v24, %v846_v23 }
 0x283   : > { %1293 = vmatmul.mubr.bf16.vlgmr.msra.gmra.mrb[8].mxu0 %v848_v25 }
 0x356   : > { %v954_v28 = vpop.f32.mrb[8].mxu0 }
 0x357   : > { %v955_v29 = vadd.f32 %v1135_v26, %v954_v28  ;;  %v1294_v30 = vpop.f32.mrb[9].mxu0 }
 0x358   : > { %v957_v32 = vpop.f32.mrb[10].mxu0 }
 0x359   : > { %v963_v33 = vadd.f32 %v961_v27, %v955_v29  ;;  %v958_v34 = vadd.f32 %v1135_v26, %v957_v32  ;;  %v1295_v35 = vpop.f32.mrb[11].mxu0 }
 0x35b   : > { %v965_v36 = vmax.f32 %v963_v33, 0.0  ;;  %v964_v37 = vadd.f32 %v962_v31, %v958_v34 }
 0x35d   : > { %967 = vst [vmem:[%s340_s12] sm:$0xff] %v965_v36  ;;  %v966_v14 = vmax.f32 %v964_v37, 0.0 }
 0x35f   : > { %968 = vst [vmem:[%s340_s12 + $0x8] sm:$0xff] %v966_v14 }
 0x360   : > { %1548 = shalt.err (!%p1545_p4)
}
 0x361   : > { %s1549_s15 = scalar_lea.hbm %s1957_s11, 256  ;;  %s1553_s8 = scalar_lea.hbm %s2008_s7, 512 }
 0x362   : > { %p1550_p9 = scmp.ne.s32.totalorder %s1957_s11, %s1549_s15  ;;  %p1554_p8 = scmp.lt.u32.totalorder %s1957_s11, %s2008_s7 }
 0x363   : > { %p1555_p13 = scmp.lt.u32.totalorder %s1553_s8, %s1549_s15  ;;  %p1557_p10 = scmp.lt.u32.totalorder %s1549_s15, %s1957_s11 }
 0x364   : > { %p1551_p0 = pnand %p1550_p9, %p1816_p5 }
 0x365   : > { %p1556_p6 = por %p1555_p13, %p1554_p8 }
 0x366   : > { %p1552_p11 = pneg %p1551_p0 }
 0x367   : > { %p1558_p3 = por %p1557_p10, %p1556_p6 }
 0x369   : > { %p1559_p7 = pnand %p1558_p3, %p1552_p11 }
 0x36b   : > { %1562 = shalt.err (!%p1559_p7)
}
 0x36c   : > { %s1620_s29 = smov 128   ;;  %s1621_s23 = smov 8  }
 0x36d   : > { %1310 = dma.vmem_to_hbm [thread:$0]  (%p1816_p5), %s1952_s21, 256, %s1957_s11, %s970_s20, %s1620_s29, %s1620_s29, %s1621_s23  }
 0x36e PF: > { %s2028_s30 = sld [smem:[#allocation15_spill]]  ;;  %s998_s28 = sand.u32 1, %s1597_s24  }
 0x36f   : > { %p2030_p1 = scmp.ge.s32.totalorder %s1609_s27, 2  ;;  %s999_s9 = scalar_lea.sflag [#allocation4], %s998_s28 }
 0x374   : > { %p2029_p12 = scmp.ne.s32.totalorder %s2028_s30, 0 }
 0x376   : > { %p1327_p2 = pnand %p2030_p1, %p2029_p12 }
 0x378   : > { %1592 = dma.done.wait (!%p1327_p2), %s999_s9, 256  }
 0x379   : > { %1594 = vsyncadd (!%p1327_p2), %s999_s9, 4294967040  ;;  %p22_p4 = scmp.ge.s32.totalorder %s1802_s22, 4   ;;  %s2031_s24 = smov %s1601_s25 }
 0x37a   : > { %s2032_s25 = smov %s1605_s26  ;;  %s2033_s26 = smov %s1812_s18 }
 0x37b   : > { %s2034_s27 = smov %s1802_s22  ;;  %24 = sbr.rel (!%p22_p4) target bundleno = 7 (0x7), region = 107 }
 0x382   :  { %1004 = vsyncpa [#allocation3], 1 }
 0x383   :  { %1006 = vsyncpa [#allocation3 + $0x1], 1 }
 0x384   :  { %1007 = vsyncpa [#allocation6], 1 }
 0x385   :  { %1008 = vsyncpa [#allocation9], 1 }
 0x386   :  { %1009 = vsyncpa [#allocation4], 1 }
 0x387   :  { %1011 = vsyncpa [#allocation4 + $0x1], 1 }

// kernel: tpu_custom_call.1
= control target key start
LH: loop header
LB: loop body
LE: loop exit
PB: predicated region body
PF: predicated region fallthrough
CT: control target
= control target key end

     0   :  { %12 = vsyncpa [#allocation3], 0  ;;  %s2001_s0 = inlined_call_operand.hbm [shape: bf16[2,16,128], index: 0, kind: input, shape index: {}]   ;;  %s2002_s1 = inlined_call_operand.hbm [shape: bf16[128,128], index: 1, kind: input, shape index: {}]   ;;  %s2003_s2 = inlined_call_operand.vmem [shape: f32[1,128], index: 2, kind: input, shape index: {}]   ;;  %s2004_s3 = inlined_call_operand.hbm [shape: bf16[3,128,128], index: 3, kind: input, shape index: {}]   ;;  %s2005_s4 = inlined_call_operand.vmem [shape: f32[1,128], index: 4, kind: input, shape index: {}]   ;;  %s2006_s5 = inlined_call_operand.hbm [shape: bf16[128,128], index: 5, kind: input, shape index: {}]   ;;  %s2007_s6 = inlined_call_operand.vmem [shape: f32[1,128], index: 6, kind: input, shape index: {}]   ;;  %s2008_s7 = inlined_call_operand.hbm [shape: f32[2,16,128], index: 7, kind: output, shape index: {}]  }
   0x1   :  { %14 = vsyncpa [#allocation3 + $0x1], 0 }
   0x2   :  { %15 = vsyncpa [#allocation6], 0 }
   0x3   :  { %16 = vsyncpa [#allocation9], 0 }
   0x4   :  { %17 = vsyncpa [#allocation4], 0 }
   0x5   :  { %19 = vsyncpa [#allocation4 + $0x1], 0  ;;  %s1662_s24 = smov 0   ;;  %s1664_s25 = smov 0  }
   0x6   :  { %s1666_s26 = smov 0   ;;  %s1668_s27 = smov 0  }
   0x7 LB: > { %s1683_s28 = sadd.s32 4294967295, %s1609_s27   ;;  %s1085_s29 = sadd.s32 4294967294, %s1609_s27   ;;  %s1609_s27 = sphi %s1668_s27, %s2034_s27   ;;  %s1605_s26 = sphi %s1666_s26, %s2033_s26   ;;  %s1601_s25 = sphi %s1664_s25, %s2032_s25   ;;  %s1597_s24 = sphi %s1662_s24, %s2031_s24  }
   0x8   : > { %p45_p0 = scmp.ne.s32.totalorder %s1601_s25, %s1597_s24  ;;  %p2009_p1 = scmp.eq.s32.totalorder %s1683_s28, 0 }
   0x9   : > { %p201_p3 = scmp.eq.s32.totalorder %s1085_s29, 1  ;;  %p1086_p5 = scmp.ge.s32.totalorder %s1609_s27, 1 }
   0xa   : > { %p1692_p4 = por %p2009_p1, %p45_p0  ;;  %p208_p7 = scmp.lt.s32.totalorder %s1609_s27, 3 }
   0xb   : > { %p1697_p6 = por %p201_p3, %p45_p0  ;;  %s1611_s10 = smov [#allocation5]  }
   0xc   : > { %s2013_s30 = scalar_select %p1692_p4, 1, 0 }
   0xd   : > { %s2014_s8 = scalar_select %p1697_p6, 1, 0 }
   0xe   : > { %p1702_p8 = pnand %p1086_p5, %p208_p7  ;;  %s220_s11 = sshll.u32 %s1611_s10, 4  ;;  %s1706_s11 = int_to_ptr.vmem [resolvable:$true] %s220_s11 }
   0xf   : > { %2015 = sst [smem:[#allocation15_spill]] %s2014_s8  ;;  %s1612_s13 = smov [#allocation7]  }
  0x10   : > { %s2016_s9 = scalar_select %p1702_p8, 1, 0 }
  0x11   : > { %p1312_p9 = pneg %p1702_p8  ;;  %s236_s14 = sshll.u32 %s1612_s13, 4  ;;  %s1717_s14 = int_to_ptr.vmem [resolvable:$true] %s236_s14 }
  0x12   : > { %s1613_s15 = smov [#allocation8]   ;;  %s1421_s19 = scalar_lea.hbm %s2002_s1, 1024 }
  0x13   : > { %p1713_p11 = pnand %p1312_p9, %p2009_p1  ;;  %s1719_s16 = sshll.u32 %s1613_s15, 4  ;;  %s253_s16 = int_to_ptr.vmem [resolvable:$true] %s1719_s16 }
  0x14   : > { %p1422_p12 = scmp.ne.s32.totalorder %s2002_s1, %s1421_s19  ;;  %p1428_p5 = scmp.lt.u32.totalorder %s1421_s19, %s2002_s1 }
  0x15   : > { %p1729_p13 = pneg %p1713_p11 }
  0x17   : > { %p1424_p0 = pnand %p1729_p13, %p1422_p12 }
  0x19   : > { %p1425_p3 = pneg %p1424_p0 }
  0x1b   : > { %p1430_p7 = pnand %p1428_p5, %p1425_p3 }
  0x1d   : > { %1433 = shalt.err (!%p1430_p7)
}
  0x1e   : > { %s1434_s10 = scalar_lea.vmem %s1706_s11, 1024  ;;  %p1442_p2 = scmp.lt.s32.totalorder %s1706_s11, %s1706_s11 }
  0x1f   : > { %p1435_p9 = scmp.ne.s32.totalorder %s1706_s11, %s1434_s10  ;;  %p1443_p6 = scmp.lt.s32.totalorder %s1434_s10, %s1434_s10 }
  0x21   : > { %p1437_p10 = pnand %p1435_p9, %p1729_p13  ;;  %p1444_p12 = por %p1443_p6, %p1442_p2 }
  0x23   : > { %p1438_p1 = pneg %p1437_p10 }
  0x25   : > { %p1445_p0 = pnand %p1444_p12, %p1438_p1 }
  0x27   : > { %1448 = shalt.err (!%p1445_p0)
}
  0x28   : > { %s1614_s13 = smov 64   ;;  %s1615_s15 = smov 4  }
  0x29   : > { %1315 = dma.hbm_to_vmem [thread:$0]  (!%p1713_p11), %s2002_s1, 1024, %s1706_s11, [#allocation6], %s1614_s13, %s1614_s13, %s1615_s15  }
  0x2a   : > { %s1449_s21 = scalar_lea.hbm %s2004_s3, 3072 }
  0x2b   : > { %p1450_p1 = scmp.ne.s32.totalorder %s2004_s3, %s1449_s21  ;;  %p1456_p10 = scmp.lt.u32.totalorder %s1449_s21, %s2004_s3 }
  0x2d   : > { %p1452_p2 = pnand %p1450_p1, %p1729_p13 }
  0x2f   : > { %p1453_p6 = pneg %p1452_p2 }
  0x31   : > { %p1458_p3 = pnand %p1456_p10, %p1453_p6 }
  0x33   : > { %1461 = shalt.err (!%p1458_p3)
}
  0x34   : > { %s1462_s11 = scalar_lea.vmem %s1717_s14, 3072  ;;  %p1470_p12 = scmp.lt.s32.totalorder %s1717_s14, %s1717_s14 }
  0x35   : > { %p1463_p5 = scmp.ne.s32.totalorder %s1717_s14, %s1462_s11  ;;  %p1471_p0 = scmp.lt.s32.totalorder %s1462_s11, %s1462_s11 }
  0x37   : > { %p1465_p7 = pnand %p1463_p5, %p1729_p13  ;;  %p1472_p1 = por %p1471_p0, %p1470_p12 }
  0x39   : > { %p1466_p9 = pneg %p1465_p7 }
  0x3b   : > { %p1473_p2 = pnand %p1472_p1, %p1466_p9 }
  0x3d   : > { %1476 = shalt.err (!%p1473_p2)
}
  0x3e   : > { %1318 = dma.hbm_to_vmem [thread:$0]  (!%p1713_p11), %s2004_s3, 3072, %s1717_s14, [#allocation6], %s1614_s13, %s1614_s13, %s1615_s15  }
  0x3f   : > { %s1477_s20 = scalar_lea.hbm %s2006_s5, 1024 }
  0x40   : > { %p1478_p6 = scmp.ne.s32.totalorder %s2006_s5, %s1477_s20  ;;  %p1484_p5 = scmp.lt.u32.totalorder %s1477_s20, %s2006_s5 }
  0x42   : > { %p1480_p10 = pnand %p1478_p6, %p1729_p13 }
  0x44   : > { %p1481_p3 = pneg %p1480_p10 }
  0x46   : > { %p1486_p7 = pnand %p1484_p5, %p1481_p3 }
  0x48   : > { %1489 = shalt.err (!%p1486_p7)
}
  0x49   : > { %s1490_s11 = scalar_lea.vmem %s253_s16, 1024  ;;  %p1498_p1 = scmp.lt.s32.totalorder %s253_s16, %s253_s16 }
  0x4a   : > { %p1491_p9 = scmp.ne.s32.totalorder %s253_s16, %s1490_s11  ;;  %p1499_p2 = scmp.lt.s32.totalorder %s1490_s11, %s1490_s11 }
  0x4c   : > { %p1493_p12 = pnand %p1491_p9, %p1729_p13  ;;  %p1500_p4 = por %p1499_p2, %p1498_p1 }
  0x4e   : > { %p1494_p0 = pneg %p1493_p12 }
  0x50   : > { %p1501_p8 = pnand %p1500_p4, %p1494_p0 }
  0x52   : > { %1504 = shalt.err (!%p1501_p8)
}
  0x53   : > { %1321 = dma.hbm_to_vmem [thread:$0]  (!%p1713_p11), %s2006_s5, 1024, %s253_s16, [#allocation9], %s1614_s13, %s1614_s13, %s1615_s15  }
  0x54   : > { %s1802_s22 = sadd.s32 1, %s1609_s27   ;;  %s32_s17 = sadd.s32 1, %s1605_s26 }
  0x55   : > { %s29_s12 = ssub.s32 %s1609_s27, %s1802_s22  ;;  %p39_p8 = scmp.ne.s32.totalorder %s1605_s26, %s1601_s25 }
  0x56   : > { %p30_p4 = scmp.eq.s32.totalorder %s29_s12, 0  ;;  %p40_p13 = scmp.eq.s32.totalorder %s1609_s27, 0 }
  0x57   : > { %p1333_p6 = scmp.lt.s32.totalorder %s1609_s27, 2  ;;  %p2019_p3 = scmp.eq.s32.totalorder %s1683_s28, 1 }
  0x58   : > { %s1812_s18 = scalar_select %p30_p4, %s1605_s26, %s32_s17  }
  0x59   : > { %p41_p10 = por %p40_p13, %p39_p8  ;;  %p1816_p5 = por %p2019_p3, %p39_p8 }
  0x5a   : > { %s269_s20 = sand.u32 1, %s1605_s26   ;;  %s1149_s21 = sshll.u32 %s1609_s27, 7 }
  0x5b   : > { %s1091_s16 = sshll.u32 %s269_s20, 3  ;;  %s1825_s10 = scalar_lea.hbm %s2001_s0, %s1149_s21 }
  0x5c   : > { %s273_s11 = scalar_lea.vmem [#allocation2], %s1091_s16  ;;  %p1827_p11 = pnand %p1333_p6, %p41_p10 }
  0x5d   : > { %s280_s14 = sshll.u32 %s273_s11, 4  ;;  %s1833_s12 = scalar_lea.sflag [#allocation3], %s269_s20  ;;  %s1831_s14 = int_to_ptr.vmem [resolvable:$true] %s280_s14 }
  0x5e   : > { %s1505_s17 = scalar_lea.hbm %s1825_s10, 128  ;;  %p1507_p9 = pneg %p1827_p11 }
  0x5f   : > { %p1506_p7 = scmp.ne.s32.totalorder %s1825_s10, %s1505_s17  ;;  %s1510_s23 = scalar_lea.hbm %s2001_s0, 256 }
  0x60   : > { %p1511_p1 = scmp.lt.u32.totalorder %s1825_s10, %s2001_s0  ;;  %p1512_p2 = scmp.lt.u32.totalorder %s1510_s23, %s1505_s17 }
  0x61   : > { %p1508_p12 = pnand %p1507_p9, %p1506_p7  ;;  %p1514_p8 = scmp.lt.u32.totalorder %s1505_s17, %s1825_s10 }
  0x62   : > { %p1513_p4 = por %p1512_p2, %p1511_p1 }
  0x63   : > { %p1509_p0 = pneg %p1508_p12 }
  0x64   : > { %p1515_p13 = por %p1514_p8, %p1513_p4 }
  0x66   : > { %p1516_p6 = pnand %p1515_p13, %p1509_p0 }
  0x68   : > { %1519 = shalt.err (!%p1516_p6)
}
  0x69   : > { %s1520_s20 = scalar_lea.vmem %s1831_s14, 128  ;;  %s1616_s21 = smov [#allocation2]  }
  0x6a   : > { %p1521_p10 = scmp.ne.s32.totalorder %s1831_s14, %s1520_s20  ;;  %s1525_s16 = sshll.u32 %s1616_s21, 4  ;;  %s1526_s16 = int_to_ptr.vmem [resolvable:$false] %s1525_s16 }
  0x6b   : > { %s1527_s29 = scalar_lea.vmem %s1526_s16, 256  ;;  %p1528_p12 = scmp.lt.s32.totalorder %s1831_s14, %s1526_s16 }
  0x6c   : > { %p1523_p3 = pnand %p1521_p10, %p1507_p9  ;;  %p1529_p1 = scmp.lt.s32.totalorder %s1527_s29, %s1520_s20 }
  0x6e   : > { %p1524_p7 = pneg %p1523_p3  ;;  %p1530_p2 = por %p1529_p1, %p1528_p12 }
  0x70   : > { %p1531_p4 = pnand %p1530_p2, %p1524_p7 }
  0x72   : > { %1534 = shalt.err (!%p1531_p4)
}
  0x73   : > { %1325 = dma.hbm_to_vmem [thread:$0]  (!%p1827_p11), %s1825_s10, 128, %s1831_s14, %s1833_s12, %s1614_s13, %s1614_s13, %s1615_s15  }
  0x74   : > { %p2022_p9 = scmp.ne.s32.totalorder %s2016_s9, 0 }
  0x75   : > { %s1867_s17 = sand.u32 (!%p2022_p9), 1, %s1601_s25   ;;  %p2023_p0 = scmp.ne.s32.totalorder (!%p2022_p9), %s2013_s30, 0 }
  0x76   : > { %292 = sbr.rel (%p2022_p9) target bundleno = 878 (0x36e), region = 48  ;;  %s1095_s23 = sshll.u32 (!%p2022_p9), %s1867_s17, 3 }
  0x77   : > { %s295_s11 = scalar_lea.sflag (!%p2022_p9), [#allocation3], %s1867_s17  ;;  %s1871_s20 = scalar_lea.vmem (!%p2022_p9), [#allocation2], %s1095_s23 }
  0x7d   : > { %1580 = dma.done.wait (%p2023_p0), %s295_s11, 128  }
  0x7e   : > { %1582 = vsyncadd (%p2023_p0), %s295_s11, 4294967168  ;;  %p2024_p11 = scmp.eq.s32.totalorder %s1683_s28, 0 }
  0x80   : > { %1584 = dma.done.wait (%p2024_p11), [#allocation6], 4096   ;;  %p2025_p8 = pmov %p2024_p11 }
  0x82   : > { %1586 = vsyncadd (%p2025_p8), [#allocation6], 4294963200  ;;  %p2026_p13 = pmov %p2025_p8 }
  0x83   : > { %p2027_p6 = pmov %p2025_p8 }
  0x84   : > { %1588 = dma.done.wait (%p2026_p13), [#allocation9], 1024  }
  0x85   : > { %1590 = vsyncadd (%p2027_p6), [#allocation9], 4294966272  ;;  %v1617_v0 = vmov 0.0   ;;  %vm1618_vm0 = vmmov 0   ;;  %v1379_v1 = vld [vmem:[#allocation5] sm:$0xff]   ;;  %v1380_v2 = vld [vmem:[#allocation5 + $0x8] sm:$0xff]   ;;  %v465_v52 = vlaneseq }
  0x86   : > { %1196 = vmatprep.subr.bf16.mxu0 %v1617_v0  ;;  %1212 = vmatprep.mubr.msk.bf16.mxu0 %vm1618_vm0, %v1617_v0  ;;  %v1381_v3 = vld [vmem:[#allocation5 + $0x10] sm:$0xff]   ;;  %v1388_v4 = vld [vmem:[#allocation7] sm:$0xff]   ;;  %v1382_v5 = vld [vmem:[#allocation5 + $0x18] sm:$0xff]   ;;  %s1099_s10 = sshll.u32 %s1867_s17, 4  ;;  %s1150_s16 = sshll.u32 %s1683_s28, 8 }
  0x87   : > { %1216 = vmatprep.subr.bf16.mxu1 %v1617_v0  ;;  %1232 = vmatprep.mubr.msk.bf16.mxu1 %vm1618_vm0, %v1617_v0  ;;  %v1390_v6 = vld [vmem:[#allocation7 + $0x8] sm:$0xff]   ;;  %v1383_v7 = vld [vmem:[#allocation5 + $0x20] sm:$0xff]   ;;  %v1392_v8 = vld [vmem:[#allocation7 + $0x10] sm:$0xff]   ;;  %v466_v55 = vshrl.u32 %v465_v52, 7  ;;  %s340_s12 = scalar_lea.vmem [#allocation10], %s1099_s10  ;;  %s1957_s11 = scalar_lea.hbm %s2008_s7, %s1150_s16 }
  0x88   : > { %1197 = vmatpush3.bf16.msra.mxu0 %v1379_v1  ;;  %1217 = vmatpush3.bf16.msra.mxu1 %v1388_v4  ;;  %v1384_v9 = vld [vmem:[#allocation5 + $0x28] sm:$0xff]   ;;  %v1394_v10 = vld [vmem:[#allocation7 + $0x18] sm:$0xff]   ;;  %v1385_v11 = vld [vmem:[#allocation5 + $0x30] sm:$0xff]   ;;  %s983_s21 = sshll.u32 %s340_s12, 4  ;;  %s1619_s28 = smov [#allocation10]   ;;  %s1952_s21 = int_to_ptr.vmem [resolvable:$true] %s983_s21 }
  0x89   : > { %1198 = vmatprep.subr.bf16.mxu0 %v1617_v0  ;;  %1218 = vmatprep.subr.bf16.mxu1 %v1617_v0  ;;  %v1396_v12 = vld [vmem:[#allocation7 + $0x20] sm:$0xff]   ;;  %v1386_v13 = vld [vmem:[#allocation5 + $0x38] sm:$0xff]   ;;  %v1398_v15 = vld [vmem:[#allocation7 + $0x28] sm:$0xff]   ;;  %vm724_vm1 = vcmp.lt.s32.totalorder %v466_v55, 1  ;;  %vm826_vm2 = vcmp.lt.s32.totalorder %v466_v55, 7  ;;  %s1535_s30 = scalar_lea.vmem %s1952_s21, 256 }
  0x8a   : > { %v1901_v14 = vld [vmem:[%s1871_s20] sm:$0xff]   ;;  %v1389_v16 = vld [vmem:[#allocation7 + $0x80] sm:$0xff]   ;;  %v1391_v17 = vld [vmem:[#allocation7 + $0x88] sm:$0xff]   ;;  %s970_s20 = scalar_lea.sflag [#allocation4], %s1867_s17  ;;  %p1536_p10 = scmp.ne.s32.totalorder %s1952_s21, %s1535_s30 }
  0x8b   : > { %v1393_v18 = vld [vmem:[#allocation7 + $0x90] sm:$0xff]   ;;  %v1395_v19 = vld [vmem:[#allocation7 + $0x98] sm:$0xff]   ;;  %v1397_v20 = vld [vmem:[#allocation7 + $0xa0] sm:$0xff]   ;;  %s1539_s9 = sshll.u32 %s1619_s28, 4  ;;  %s1540_s9 = int_to_ptr.vmem [resolvable:$false] %s1539_s9 }
  0x8c   : > { %1199 = vmatpush3.bf16.msra.mxu0 %v1380_v2  ;;  %1219 = vmatpush3.bf16.msra.mxu1 %v1390_v6  ;;  %v1399_v21 = vld [vmem:[#allocation7 + $0xa8] sm:$0xff]   ;;  %v1400_v22 = vld [vmem:[#allocation7 + $0x30] sm:$0xff]   ;;  %v1402_v24 = vld [vmem:[#allocation7 + $0x38] sm:$0xff]   ;;  %v472_v6 = vand.u32 15, %v466_v55  ;;  %p1537_p3 = pnand %p1536_p10, %p1816_p5  ;;  %s1541_s13 = scalar_lea.vmem %s1540_s9, 512 }
  0x8d   : > { %1200 = vmatprep.subr.bf16.mxu0 %v1617_v0  ;;  %1220 = vmatprep.subr.bf16.mxu1 %v1617_v0  ;;  %v1401_v23 = vld [vmem:[#allocation7 + $0xb0] sm:$0xff]   ;;  %v1403_v25 = vld [vmem:[#allocation7 + $0xb8] sm:$0xff]   ;;  %v1404_v35 = vld [vmem:[#allocation7 + $0x40] sm:$0xff]   ;;  %p1542_p12 = scmp.lt.s32.totalorder %s1952_s21, %s1540_s9  ;;  %p1543_p1 = scmp.lt.s32.totalorder %s1541_s13, %s1535_s30 }
  0x8e   : > { %v1100_v26 = vld [vmem:[%s2003_s2] ss:$0 sm:$0xff]  ;;  %v1405_v37 = vld [vmem:[#allocation7 + $0x48] sm:$0xff]   ;;  %v1407_v39 = vld [vmem:[#allocation7 + $0x58] sm:$0xff]   ;;  %vm720_vm3 = vcmp.eq.s32.totalorder %v472_v6, 0  ;;  %p1538_p7 = pneg %p1537_p3 }
  0x8f   : > { %v1406_v38 = vld [vmem:[#allocation7 + $0x50] sm:$0xff]   ;;  %v1408_v40 = vld [vmem:[#allocation7 + $0x60] sm:$0xff]   ;;  %v1409_v41 = vld [vmem:[#allocation7 + $0x68] sm:$0xff]   ;;  %p1544_p2 = por %p1543_p1, %p1542_p12 }
  0x90   : > { %1201 = vmatpush3.bf16.msra.mxu0 %v1381_v3  ;;  %1221 = vmatpush3.bf16.msra.mxu1 %v1392_v8  ;;  %v1410_v42 = vld [vmem:[#allocation7 + $0x70] sm:$0xff]   ;;  %v1411_v43 = vld [vmem:[#allocation7 + $0x78] sm:$0xff]   ;;  %v1412_v44 = vld [vmem:[#allocation8] sm:$0xff]  }
  0x91   : > { %1202 = vmatprep.subr.bf16.mxu0 %v1617_v0  ;;  %1222 = vmatprep.subr.bf16.mxu1 %v1617_v0  ;;  %v1413_v45 = vld [vmem:[#allocation8 + $0x8] sm:$0xff]   ;;  %v1414_v46 = vld [vmem:[#allocation8 + $0x10] sm:$0xff]   ;;  %v1415_v47 = vld [vmem:[#allocation8 + $0x18] sm:$0xff]   ;;  %p1545_p4 = pnand %p1544_p2, %p1538_p7 }
  0x92   : > { %v1416_v48 = vld [vmem:[#allocation8 + $0x20] sm:$0xff]   ;;  %v1417_v49 = vld [vmem:[#allocation8 + $0x28] sm:$0xff]   ;;  %v1418_v50 = vld [vmem:[#allocation8 + $0x30] sm:$0xff]  }
  0x93   : > { %v1419_v51 = vld [vmem:[#allocation8 + $0x38] sm:$0xff]  }
  0x94   : > { %1203 = vmatpush3.bf16.msra.mxu0 %v1382_v5  ;;  %1223 = vmatpush3.bf16.msra.mxu1 %v1394_v10 }
  0x95   : > { %1204 = vmatprep.subr.bf16.mxu0 %v1617_v0  ;;  %1224 = vmatprep.subr.bf16.mxu1 %v1617_v0 }
  0x98   : > { %1205 = vmatpush3.bf16.msra.mxu0 %v1383_v7  ;;  %1225 = vmatpush3.bf16.msra.mxu1 %v1396_v12  ;;  %v467_v7 = vadd.s32 8, %v466_v55 }
  0x99   : > { %1206 = vmatprep.subr.bf16.mxu0 %v1617_v0  ;;  %1226 = vmatprep.subr.bf16.mxu1 %v1617_v0 }
  0x9a   : > { %v479_v8 = vand.u32 15, %v467_v7 }
  0x9c   : > { %1207 = vmatpush3.bf16.msra.mxu0 %v1384_v9  ;;  %1227 = vmatpush3.bf16.msra.mxu1 %v1398_v15  ;;  %vm823_vm4 = vcmp.eq.s32.totalorder %v479_v8, 15 }
  0x9d   : > { %1208 = vmatprep.subr.bf16.mxu0 %v1617_v0  ;;  %1228 = vmatprep.subr.bf16.mxu1 %v1617_v0 }
  0xa0   : > { %1209 = vmatpush3.bf16.msra.mxu0 %v1385_v11  ;;  %1229 = vmatpush3.bf16.msra.mxu1 %v1400_v22 }
  0xa1   : > { %1210 = vmatprep.subr.bf16.mxu0 %v1617_v0  ;;  %1230 = vmatprep.subr.bf16.mxu1 %v1617_v0 }
  0xa4   : > { %1211 = vmatpush3.bf16.msra.mxu0 %v1386_v13  ;;  %1231 = vmatpush3.bf16.msra.mxu1 %v1402_v24  ;;  %v1134_v13 = vld [vmem:[%s2005_s4] ss:$0 sm:$0xff] }
  0xa5   : > { %1236 = vmatprep.subr.bf16.mxu0 %v1617_v0  ;;  %1256 = vmatprep.subr.bf16.mxu1 %v1617_v0 }
  0xa7   : > { %1213 = vmatmul.mubr.bf16.vlgmr.msra.gmra.mrb[0].mxu0 %v1901_v14 }
  0xa8   : > { %1237 = vmatpush3.bf16.msra.mxu0 %v1389_v16  ;;  %1252 = vmatprep.mubr.msk.bf16.mxu0 %vm1618_vm0, %v1617_v0 }
  0xa9   : > { %1238 = vmatprep.subr.bf16.mxu0 %v1617_v0 }
  0xac   : > { %1239 = vmatpush3.bf16.msra.mxu0 %v1391_v17 }
  0xad   : > { %1240 = vmatprep.subr.bf16.mxu0 %v1617_v0 }
  0xb0   : > { %1241 = vmatpush3.bf16.msra.mxu0 %v1393_v18 }
  0xb1   : > { %1242 = vmatprep.subr.bf16.mxu0 %v1617_v0 }
  0xb4   : > { %1243 = vmatpush3.bf16.msra.mxu0 %v1395_v19 }
  0xb5   : > { %1244 = vmatprep.subr.bf16.mxu0 %v1617_v0 }
  0xb8   : > { %1245 = vmatpush3.bf16.msra.mxu0 %v1397_v20 }
  0xb9   : > { %1246 = vmatprep.subr.bf16.mxu0 %v1617_v0 }
  0xbc   : > { %1247 = vmatpush3.bf16.msra.mxu0 %v1399_v21 }
  0xbd   : > { %1248 = vmatprep.subr.bf16.mxu0 %v1617_v0 }
  0xc0   : > { %1249 = vmatpush3.bf16.msra.mxu0 %v1401_v23 }
  0xc1   : > { %1250 = vmatprep.subr.bf16.mxu0 %v1617_v0 }
  0xc4   : > { %1251 = vmatpush3.bf16.msra.mxu0 %v1403_v25 }
  0xc5   : > { %1276 = vmatprep.subr.bf16.mxu0 %v1617_v0 }
 0x17a   : > { %v455_v27 = vpop.f32.mrb[0].mxu0 }
 0x17b   : > { %v456_v28 = vadd.f32 %v1100_v26, %v455_v27  ;;  %v1214_v29 = vpop.f32.mrb[1].mxu0  ;;  %v961_v27 = vunpack.c.l.bf16 %v1901_v14 }
 0x17c   : > { %v458_v30 = vpop.f32.mrb[2].mxu0 }
 0x17d   : > { %v459_v31 = vadd.f32 %v1100_v26, %v458_v30  ;;  %v1215_v32 = vpop.f32.mrb[3].mxu0  ;;  %v462_v33 = vmax.f32 %v456_v28, 0.0  ;;  %v1135_v26 = vld [vmem:[%s2007_s6] ss:$0 sm:$0xff] }
 0x17f   : > { %v463_v34 = vmax.f32 %v459_v31, 0.0  ;;  %v962_v31 = vunpack.c.h.bf16 %v1901_v14 }
 0x181   : > { %v464_v36 = vpack.c.bf16 %v463_v34, %v462_v33 }
 0x183   : > { %1233 = vmatmul.mubr.bf16.vlgmr.msra.gmra.mrb[0].mxu1 %v464_v36  ;;  %1253 = vmatmul.mubr.bf16.vlgmr.msra.gmra.mrb[4].mxu0 %v464_v36 }
 0x184   : > { %1257 = vmatpush3.bf16.msra.mxu1 %v1404_v35  ;;  %1272 = vmatprep.mubr.msk.bf16.mxu1 %vm1618_vm0, %v1617_v0 }
 0x185   : > { %1258 = vmatprep.subr.bf16.mxu1 %v1617_v0  ;;  %1292 = vmatprep.mubr.msk.bf16.mxu0 %vm1618_vm0, %v1617_v0 }
 0x186   : > { %1277 = vmatpush3.bf16.msra.mxu0 %v1412_v44 }
 0x187   : > { %1278 = vmatprep.subr.bf16.mxu0 %v1617_v0 }
 0x188   : > { %1259 = vmatpush3.bf16.msra.mxu1 %v1405_v37 }
 0x189   : > { %1260 = vmatprep.subr.bf16.mxu1 %v1617_v0 }
 0x18a   : > { %1279 = vmatpush3.bf16.msra.mxu0 %v1413_v45 }
 0x18b   : > { %1280 = vmatprep.subr.bf16.mxu0 %v1617_v0 }
 0x18c   : > { %1261 = vmatpush3.bf16.msra.mxu1 %v1406_v38 }
 0x18d   : > { %1262 = vmatprep.subr.bf16.mxu1 %v1617_v0 }
 0x18e   : > { %1281 = vmatpush3.bf16.msra.mxu0 %v1414_v46 }
 0x18f   : > { %1282 = vmatprep.subr.bf16.mxu0 %v1617_v0 }
 0x190   : > { %1263 = vmatpush3.bf16.msra.mxu1 %v1407_v39 }
 0x191   : > { %1264 = vmatprep.subr.bf16.mxu1 %v1617_v0 }
 0x192   : > { %1283 = vmatpush3.bf16.msra.mxu0 %v1415_v47 }
 0x193   : > { %1284 = vmatprep.subr.bf16.mxu0 %v1617_v0 }
 0x194   : > { %1265 = vmatpush3.bf16.msra.mxu1 %v1408_v40 }
 0x195   : > { %1266 = vmatprep.subr.bf16.mxu1 %v1617_v0 }
 0x196   : > { %1285 = vmatpush3.bf16.msra.mxu0 %v1416_v48 }
 0x197   : > { %1286 = vmatprep.subr.bf16.mxu0 %v1617_v0 }
 0x198   : > { %1267 = vmatpush3.bf16.msra.mxu1 %v1409_v41 }
 0x199   : > { %1268 = vmatprep.subr.bf16.mxu1 %v1617_v0 }
 0x19a   : > { %1287 = vmatpush3.bf16.msra.mxu0 %v1417_v49 }
 0x19b   : > { %1288 = vmatprep.subr.bf16.mxu0 %v1617_v0 }
 0x19c   : > { %1269 = vmatpush3.bf16.msra.mxu1 %v1410_v42 }
 0x19d   : > { %1270 = vmatprep.subr.bf16.mxu1 %v1617_v0 }
 0x19e   : > { %1289 = vmatpush3.bf16.msra.mxu0 %v1418_v50 }
 0x19f   : > { %1290 = vmatprep.subr.bf16.mxu0 %v1617_v0 }
 0x1a0   : > { %1271 = vmatpush3.bf16.msra.mxu1 %v1411_v43 }
 0x1a2   : > { %1291 = vmatpush3.bf16.msra.mxu0 %v1419_v51 }
 0x1a3   : > { %1273 = vmatmul.mubr.bf16.vlgmr.msra.gmra.mrb[4].mxu1 %v464_v36 }
 0x256   : > { %v590_v53 = vpop.f32.mrb[0].mxu1  ;;  %v713_v54 = vpop.f32.mrb[4].mxu0 }
 0x257   : > { %v1234_v56 = vpop.f32.mrb[1].mxu1  ;;  %v1254_v57 = vpop.f32.mrb[5].mxu0  ;;  %v722_v60 = vrot.slane %v590_v53, 7  ;;  %v824_v61 = vrot.slane %v713_v54, 1 }
 0x258   : > { %v593_v58 = vpop.f32.mrb[2].mxu1  ;;  %v716_v59 = vpop.f32.mrb[6].mxu0 }
 0x259   : > { %v723_v62 = vrot.slane %v593_v58, 7  ;;  %v825_v63 = vrot.slane %v716_v59, 1  ;;  %v1235_v1 = vpop.f32.mrb[3].mxu1  ;;  %v1255_v2 = vpop.f32.mrb[7].mxu0 }
 0x25b   : > { %v726_v3 = vsel %vm724_vm1, %v723_v62, %v722_v60  ;;  %v827_v0 = vsel %vm826_vm2, %v824_v61, %v825_v63  ;;  %v725_v4 = vsel %vm724_vm1, %v722_v60, %v723_v62  ;;  %v828_v5 = vsel %vm826_vm2, %v825_v63, %v824_v61 }
 0x25c   : > { %v731_v9 = vsel %vm720_vm3, 0.0, %v726_v3  ;;  %v834_v19 = vsel %vm823_vm4, 0.0, %v828_v5 }
 0x276   : > { %v815_v10 = vpop.f32.mrb[4].mxu1 }
 0x277   : > { %v816_v11 = vadd.f32 %v815_v10, %v731_v9  ;;  %v1274_v12 = vpop.f32.mrb[5].mxu1 }
 0x278   : > { %v818_v15 = vpop.f32.mrb[6].mxu1 }
 0x279   : > { %v835_v16 = vadd.f32 %v827_v0, %v816_v11  ;;  %v819_v17 = vadd.f32 %v818_v15, %v725_v4  ;;  %v1275_v18 = vpop.f32.mrb[7].mxu1 }
 0x27b   : > { %v844_v20 = vadd.f32 %v1134_v13, %v835_v16  ;;  %v836_v21 = vadd.f32 %v834_v19, %v819_v17 }
 0x27d   : > { %v845_v22 = vadd.f32 %v1134_v13, %v836_v21  ;;  %v846_v23 = vmax.f32 %v844_v20, 0.0 }
 0x27f   : > { %v847_v24 = vmax.f32 %v845_v22, 0.0 }
 0x281   : > { %v848_v25 = vpack.c.bf16 %v847_v24, %v846_v23 }
 0x283   : > { %1293 = vmatmul.mubr.bf16.vlgmr.msra.gmra.mrb[8].mxu0 %v848_v25 }
 0x356   : > { %v954_v28 = vpop.f32.mrb[8].mxu0 }
 0x357   : > { %v955_v29 = vadd.f32 %v1135_v26, %v954_v28  ;;  %v1294_v30 = vpop.f32.mrb[9].mxu0 }
 0x358   : > { %v957_v32 = vpop.f32.mrb[10].mxu0 }
 0x359   : > { %v963_v33 = vadd.f32 %v961_v27, %v955_v29  ;;  %v958_v34 = vadd.f32 %v1135_v26, %v957_v32  ;;  %v1295_v35 = vpop.f32.mrb[11].mxu0 }
 0x35b   : > { %v965_v36 = vmax.f32 %v963_v33, 0.0  ;;  %v964_v37 = vadd.f32 %v962_v31, %v958_v34 }
 0x35d   : > { %967 = vst [vmem:[%s340_s12] sm:$0xff] %v965_v36  ;;  %v966_v14 = vmax.f32 %v964_v37, 0.0 }
 0x35f   : > { %968 = vst [vmem:[%s340_s12 + $0x8] sm:$0xff] %v966_v14 }
 0x360   : > { %1548 = shalt.err (!%p1545_p4)
}
 0x361   : > { %s1549_s15 = scalar_lea.hbm %s1957_s11, 256  ;;  %s1553_s8 = scalar_lea.hbm %s2008_s7, 512 }
 0x362   : > { %p1550_p9 = scmp.ne.s32.totalorder %s1957_s11, %s1549_s15  ;;  %p1554_p8 = scmp.lt.u32.totalorder %s1957_s11, %s2008_s7 }
 0x363   : > { %p1555_p13 = scmp.lt.u32.totalorder %s1553_s8, %s1549_s15  ;;  %p1557_p10 = scmp.lt.u32.totalorder %s1549_s15, %s1957_s11 }
 0x364   : > { %p1551_p0 = pnand %p1550_p9, %p1816_p5 }
 0x365   : > { %p1556_p6 = por %p1555_p13, %p1554_p8 }
 0x366   : > { %p1552_p11 = pneg %p1551_p0 }
 0x367   : > { %p1558_p3 = por %p1557_p10, %p1556_p6 }
 0x369   : > { %p1559_p7 = pnand %p1558_p3, %p1552_p11 }
 0x36b   : > { %1562 = shalt.err (!%p1559_p7)
}
 0x36c   : > { %s1620_s29 = smov 128   ;;  %s1621_s23 = smov 8  }
 0x36d   : > { %1310 = dma.vmem_to_hbm [thread:$0]  (%p1816_p5), %s1952_s21, 256, %s1957_s11, %s970_s20, %s1620_s29, %s1620_s29, %s1621_s23  }
 0x36e PF: > { %s2028_s30 = sld [smem:[#allocation15_spill]]  ;;  %s998_s28 = sand.u32 1, %s1597_s24  }
 0x36f   : > { %p2030_p1 = scmp.ge.s32.totalorder %s1609_s27, 2  ;;  %s999_s9 = scalar_lea.sflag [#allocation4], %s998_s28 }
 0x374   : > { %p2029_p12 = scmp.ne.s32.totalorder %s2028_s30, 0 }
 0x376   : > { %p1327_p2 = pnand %p2030_p1, %p2029_p12 }
 0x378   : > { %1592 = dma.done.wait (!%p1327_p2), %s999_s9, 256  }
 0x379   : > { %1594 = vsyncadd (!%p1327_p2), %s999_s9, 4294967040  ;;  %p22_p4 = scmp.ge.s32.totalorder %s1802_s22, 4   ;;  %s2031_s24 = smov %s1601_s25 }
 0x37a   : > { %s2032_s25 = smov %s1605_s26  ;;  %s2033_s26 = smov %s1812_s18 }
 0x37b   : > { %s2034_s27 = smov %s1802_s22  ;;  %24 = sbr.rel (!%p22_p4) target bundleno = 7 (0x7), region = 107 }
 0x382   :  { %1004 = vsyncpa [#allocation3], 1 }
 0x383   :  { %1006 = vsyncpa [#allocation3 + $0x1], 1 }
 0x384   :  { %1007 = vsyncpa [#allocation6], 1 }
 0x385   :  { %1008 = vsyncpa [#allocation9], 1 }
 0x386   :  { %1009 = vsyncpa [#allocation4], 1 }
 0x387   :  { %1011 = vsyncpa [#allocation4 + $0x1], 1 }

</bundles_post_ra>
